<compile_context>
chip_gen: v7x
topology: tpu7x:2x2x1
jax: 0.10.0
libtpu: 0.0.40
codegen_flags: <defaults>
</compile_context>

<pallas_src>
import functools

import jax
import jax.numpy as jnp
from jax.experimental import pallas as pl
from jax.experimental.pallas import tpu as pltpu

NEG_INF = -1000000000.0
LEAKY_SLOPE = 0.1


def _leaky(x):
    return jnp.where(x >= 0, x, LEAKY_SLOPE * x)


# ----------------------------------------------------------------------------
# Fused kernel: one grid step = one (anchor, other) pair.
#   x_ref    : (1, 2B, T, 4)  rows 0..B-1 = anchor side, B..2B-1 = other side
#   len_ref  : (1, 2B, 1)     int32 lengths, same row layout
#   mrow_ref : (1, 2B, T, 1)  point-validity mask (row orientation)
#   mcol_ref : (1, 2B, 1, T)  point-validity mask (column orientation)
#   outputs  : fa (1, B, H) gated residual embedding of the anchor side
#              fb (1, B, H) raw LSTM embedding of the other side
# ----------------------------------------------------------------------------
def _tmn_pair_kernel(H, B,
                     x_ref, len_ref, mrow_ref, mcol_ref,
                     mlpw_ref, mlpb_ref, wl_ref, bl_ref, wr_ref, br_ref,
                     fa_ref, fb_ref):
    n = 2 * B
    x = x_ref[0]                       # (2B, T, 4)
    T = x.shape[1]

    w = mlpw_ref[...]                  # (2, H2)
    bias = mlpb_ref[...]               # (1, H2)

    # mlp_ele(first two features) + LeakyReLU(0.1) -- K=2 is too small for the MXU,
    # so express it as two VPU broadcast FMAs.
    mlp = _leaky(x[:, :, 0:1] * w[0:1, :] + x[:, :, 1:2] * w[1:2, :] + bias)   # (2B,T,H2)
    mlp_a, mlp_b = mlp[0:B], mlp[B:n]            # (B, T, H2) each

    mrow = mrow_ref[0]                 # (2B, T, 1)
    mcol = mcol_ref[0]                 # (2B, 1, T)
    ma_row, mb_row = mrow[0:B], mrow[B:n]
    ma_col, mb_col = mcol[0:B], mcol[B:n]

    # pairwise validity via broadcast products (no matmuls, no relayouts)
    valid_ab = ma_row * mb_col         # (B, Ta, Tb)
    valid_ba = mb_row * ma_col         # (B, Tb, Ta)

    # ---- attention, a attends over b ----
    s_ab = jnp.einsum('btk,bsk->bts', mlp_a, mlp_b,
                      preferred_element_type=jnp.float32)       # (B, Ta, Tb)
    s_ab = jnp.where(valid_ab > 0.5, s_ab, NEG_INF)
    pa = jnp.exp(s_ab - jnp.max(s_ab, axis=-1, keepdims=True))
    pa = (pa / jnp.sum(pa, axis=-1, keepdims=True)) * valid_ab
    sum_traj_b = jnp.einsum('bts,bsk->btk', pa, mlp_b,
                            preferred_element_type=jnp.float32)  # (B, Ta, H2)

    # ---- attention, b attends over a (reference uses the transposed masked scores) ----
    s_ba = jnp.einsum('bsk,btk->bst', mlp_b, mlp_a,
                      preferred_element_type=jnp.float32)       # (B, Tb, Ta)
    s_ba = jnp.where(valid_ba > 0.5, s_ba, NEG_INF)
    pb = jnp.exp(s_ba - jnp.max(s_ba, axis=-1, keepdims=True))
    pb = (pb / jnp.sum(pb, axis=-1, keepdims=True)) * valid_ba
    sum_traj_a = jnp.einsum('bst,btk->bsk', pb, mlp_a,
                            preferred_element_type=jnp.float32)  # (B, Tb, H2)

    # cell inputs for all 2B sequences: [mlp, mlp - attended_sum]
    summed = jnp.concatenate([sum_traj_b, sum_traj_a], axis=0)   # (2B, T, H2)
    x_all = jnp.concatenate([mlp, mlp - summed], axis=-1)        # (2B, T, H)

    # ---- single-layer LSTM over all 2B sequences, fused gate matmul, static unroll ----
    lens = len_ref[0]                  # (2B, 1) int32
    w_lstm = wl_ref[...]               # (2H, 4H) = [W_ih^T ; W_hh^T], gate order i,f,g,o
    b_lstm = bl_ref[...]               # (1, 4H)

    h = jnp.zeros((n, H), jnp.float32)
    c = jnp.zeros((n, H), jnp.float32)
    final = jnp.zeros((n, H), jnp.float32)
    for t in range(T):                 # T is small & static -> full unroll
        x_t = x_all[:, t, :]                                        # (2B, H)
        xh = jnp.concatenate([x_t, h], axis=1)                      # (2B, 2H)
        gates = jnp.dot(xh, w_lstm,
                        preferred_element_type=jnp.float32) + b_lstm    # (2B, 4H)
        i_g = jax.nn.sigmoid(gates[:, 0:H])
        f_g = jax.nn.sigmoid(gates[:, H:2 * H])
        g_g = jnp.tanh(gates[:, 2 * H:3 * H])
        o_g = jax.nn.sigmoid(gates[:, 3 * H:4 * H])
        c = f_g * c + i_g * g_g
        h = o_g * jnp.tanh(c)
        # capture hidden state at the last valid step of each sequence
        final = jnp.where(lens == (t + 1), h, final)

    # ---- fused residual gate (W1|W2|W3 packed into one (H,3H) matmul) ----
    r = jnp.dot(final, wr_ref[...],
                preferred_element_type=jnp.float32) + br_ref[...]       # (2B, 3H)
    gate1 = jax.nn.sigmoid(r[:, 0:H]) * _leaky(r[:, H:2 * H])
    hat = jax.nn.sigmoid(r[:, 2 * H:3 * H]) * _leaky(gate1)
    gated = final + hat

    fa_ref[0] = gated[0:B]        # anchor side: gated residual output at len-1
    fb_ref[0] = final[B:n]        # other side : raw LSTM output at len-1 (reference behavior)


def tmn_pairs_forward(params, traj_pairs, len_pairs, mask_pairs, hidden):
    """traj_pairs: (2, 2B, T, 4); len_pairs: (2, 2B, 1) int32; mask_pairs: (2, 2B, T).

    Returns (fa, fb), each (2, B, H).
    """
    P, n, T, F = traj_pairs.shape
    B = n // 2
    H = hidden
    H2 = H // 2

    mask_row = mask_pairs[..., None]           # (P, 2B, T, 1)
    mask_col = mask_pairs[:, :, None, :]       # (P, 2B, 1, T)

    kernel = functools.partial(_tmn_pair_kernel, H, B)
    return pl.pallas_call(
        kernel,
        out_shape=(jax.ShapeDtypeStruct((P, B, H), jnp.float32),
                   jax.ShapeDtypeStruct((P, B, H), jnp.float32)),
        grid=(P,),
        in_specs=[
            pl.BlockSpec((1, n, T, F), lambda p: (p, 0, 0, 0)),
            pl.BlockSpec((1, n, 1), lambda p: (p, 0, 0)),
            pl.BlockSpec((1, n, T, 1), lambda p: (p, 0, 0, 0)),
            pl.BlockSpec((1, n, 1, T), lambda p: (p, 0, 0, 0)),
            pl.BlockSpec((2, H2), lambda p: (0, 0)),
            pl.BlockSpec((1, H2), lambda p: (0, 0)),
            pl.BlockSpec((2 * H, 4 * H), lambda p: (0, 0)),
            pl.BlockSpec((1, 4 * H), lambda p: (0, 0)),
            pl.BlockSpec((H, 3 * H), lambda p: (0, 0)),
            pl.BlockSpec((1, 3 * H), lambda p: (0, 0)),
        ],
        out_specs=(
            pl.BlockSpec((1, B, H), lambda p: (p, 0, 0)),
            pl.BlockSpec((1, B, H), lambda p: (p, 0, 0)),
        ),
        compiler_params=pltpu.CompilerParams(dimension_semantics=("parallel",)),
    )(traj_pairs, len_pairs, mask_row, mask_col,
      params["mlp_w"], params["mlp_b"],
      params["w_lstm"], params["b_lstm"],
      params["w_res"], params["b_res"])


# ----------------------------------------------------------------------------
# TMN.forward glue
# ----------------------------------------------------------------------------
def make_tmn_forward(grid_size, sam_spatial_width, hidden):
    G0, G1 = grid_size
    off = float(G1 * sam_spatial_width + sam_spatial_width)
    cap = float(G0 * G1)

    @jax.jit
    def fwd(params, anchor, trajs, neg, len_a, len_t, len_n):
        # pad to a common T so both attention sides batch into one LSTM
        T = max(anchor.shape[1], trajs.shape[1], neg.shape[1])

        def pad(x):
            return jnp.pad(x, ((0, 0), (0, T - x.shape[1]), (0, 0)))

        anchor_p, trajs_p, neg_p = pad(anchor), pad(trajs), pad(neg)
        # pair 0: (anchor, trajs), pair 1: (anchor, neg); rows 0..B-1 = anchor side
        traj_pairs = jnp.stack([jnp.concatenate([anchor_p, trajs_p], axis=0),
                                jnp.concatenate([anchor_p, neg_p], axis=0)], axis=0)
        len_pairs = jnp.stack([jnp.concatenate([len_a, len_t]),
                               jnp.concatenate([len_a, len_n])],
                              axis=0).astype(jnp.int32)[..., None]          # (2, 2B, 1)

        # point validity: (grid_y*G1 + grid_x - off + 1).clamp(0, G0*G1).long() != 0
        g = jnp.clip(traj_pairs[..., 3] * G1 + traj_pairs[..., 2] - off + 1.0, 0.0, cap)
        mask_pairs = (g >= 1.0).astype(jnp.float32)                         # (2, 2B, T)

        fa, fb = tmn_pairs_forward(params, traj_pairs, len_pairs,
                                   mask_pairs, hidden)                       # (2, B, H) each

        # exp(F.pairwise_distance(., ., p=2, eps=1e-6)) = exp(||fa - fb + 1e-6||_2)
        dist = jnp.sqrt(jnp.sum(jnp.square(fa - fb + 1e-6), axis=-1))        # (2, B)
        losses = jnp.exp(dist)
        return losses[0], losses[1]

    return fwd


# ----------------------------------------------------------------------------
# Deterministic parameter init (shapes follow the PyTorch module), pre-fused
# ----------------------------------------------------------------------------
def init_params(key, hidden):
    H = hidden
    H2 = H // 2
    ks = jax.random.split(key, 12)
    u = lambda k, shape, s: jax.random.uniform(k, shape, jnp.float32, -s, s)

    mlp_W = u(ks[0], (H2, 2), 0.5)         # torch Linear(2, H//2).weight
    mlp_bias = u(ks[1], (H2,), 0.5)

    wih = u(ks[2], (4 * H, H), 0.2)        # torch LSTM weight_ih_l0 (gate order i,f,g,o)
    whh = u(ks[3], (4 * H, H), 0.2)
    bih = u(ks[4], (4 * H,), 0.2)
    bhh = u(ks[5], (4 * H,), 0.2)

    W1, b1 = u(ks[6], (H, H), 0.2), u(ks[7], (H,), 0.2)
    W2, b2 = u(ks[8], (H, H), 0.2), u(ks[9], (H,), 0.2)
    W3, b3 = u(ks[10], (H, H), 0.2), u(ks[11], (H,), 0.2)

    return {
        "mlp_w": mlp_W.T,                                    # (2, H2)
        "mlp_b": mlp_bias.reshape(1, H2),                    # (1, H2)
        # fused [x|h] -> gates:  [W_ih^T ; W_hh^T]  (2H, 4H)
        "w_lstm": jnp.concatenate([wih.T, whh.T], axis=0),
        "b_lstm": (bih + bhh).reshape(1, 4 * H),
        # fused residual gate weights  [W1^T | W2^T | W3^T]  (H, 3H)
        "w_res": jnp.concatenate([W1.T, W2.T, W3.T], axis=1),
        "b_res": jnp.concatenate([b1, b2, b3]).reshape(1, 3 * H),
    }


# ----------------------------------------------------------------------------
# Main
# ----------------------------------------------------------------------------
if __name__ == "__main__":
    B, T, F = 2, 8, 4
    hidden = 32                 # TMN target_size
    grid_size = (16, 16)
    sam_spatial_width = 2

    key = jax.random.PRNGKey(0)
    kp, ka, kt, kn, kga, kgt, kgn = jax.random.split(key, 7)
    params = init_params(kp, hidden)

    def make_traj(kf, kg):
        feats = jax.random.uniform(kf, (B, T, 2), jnp.float32)
        grid_xy = jax.random.randint(kg, (B, T, 2), 0, 16).astype(jnp.float32)
        return jnp.concatenate([feats, grid_xy], axis=-1)    # (B, T, 4)

    anchor = make_traj(ka, kga)
    trajs = make_traj(kt, kgt)
    neg = make_traj(kn, kgn)

    len_a = jnp.array([8, 5], dtype=jnp.int32)
    len_t = jnp.array([6, 8], dtype=jnp.int32)
    len_n = jnp.array([7, 4], dtype=jnp.int32)

    tmn_forward = make_tmn_forward(grid_size, sam_spatial_width, hidden)
    trajs_loss, negative_loss = tmn_forward(params, anchor, trajs, neg,
                                            len_a, len_t, len_n)
    jax.block_until_ready((trajs_loss, negative_loss))
    assert trajs_loss.shape == (B,) and negative_loss.shape == (B,)
    print("KERNEL_OK")
</pallas_src>

<mosaic_0001>
module attributes {stable_mosaic.version = 11 : i64} {
  func.func @_tmn_pair_kernel(%arg0: i32, %arg1: memref<1x4x8x4xf32, #tpu.memory_space<vmem>>, %arg2: memref<1x4x1xi32, #tpu.memory_space<vmem>>, %arg3: memref<1x4x8x1xf32, #tpu.memory_space<vmem>>, %arg4: memref<1x4x1x8xf32, #tpu.memory_space<vmem>>, %arg5: memref<2x16xf32, #tpu.memory_space<vmem>>, %arg6: memref<1x16xf32, #tpu.memory_space<vmem>>, %arg7: memref<64x128xf32, #tpu.memory_space<vmem>>, %arg8: memref<1x128xf32, #tpu.memory_space<vmem>>, %arg9: memref<32x96xf32, #tpu.memory_space<vmem>>, %arg10: memref<1x96xf32, #tpu.memory_space<vmem>>, %arg11: memref<1x2x32xf32, #tpu.memory_space<vmem>>, %arg12: memref<1x2x32xf32, #tpu.memory_space<vmem>>) attributes {dimension_semantics = [#tpu.dimension_semantics<parallel>], iteration_bounds = array<i64: 2>, scalar_prefetch = 0 : i64, scratch_operands = 0 : i64, tpu.core_type = #tpu.core_type<tc>, window_params = [{transform_indices = @transform_0, window_bounds = array<i64: 1, 4, 8, 4>}, {transform_indices = @transform_1, window_bounds = array<i64: 1, 4, 1>}, {transform_indices = @transform_2, window_bounds = array<i64: 1, 4, 8, 1>}, {transform_indices = @transform_3, window_bounds = array<i64: 1, 4, 1, 8>}, {pipeline_mode = #tpu.pipeline_mode<synchronous>, transform_indices = @transform_4, window_bounds = array<i64: 2, 16>}, {pipeline_mode = #tpu.pipeline_mode<synchronous>, transform_indices = @transform_5, window_bounds = array<i64: 1, 16>}, {pipeline_mode = #tpu.pipeline_mode<synchronous>, transform_indices = @transform_6, window_bounds = array<i64: 64, 128>}, {pipeline_mode = #tpu.pipeline_mode<synchronous>, transform_indices = @transform_7, window_bounds = array<i64: 1, 128>}, {pipeline_mode = #tpu.pipeline_mode<synchronous>, transform_indices = @transform_8, window_bounds = array<i64: 32, 96>}, {pipeline_mode = #tpu.pipeline_mode<synchronous>, transform_indices = @transform_9, window_bounds = array<i64: 1, 96>}, {transform_indices = @transform_10, window_bounds = array<i64: 1, 2, 32>}, {transform_indices = @transform_11, window_bounds = array<i64: 1, 2, 32>}]} {
    %c0 = arith.constant 0 : index
    %c0_0 = arith.constant 0 : index
    %c0_1 = arith.constant 0 : index
    %c0_2 = arith.constant 0 : index
    %0 = vector.load %arg1[%c0, %c0_0, %c0_1, %c0_2] : memref<1x4x8x4xf32, #tpu.memory_space<vmem>>, vector<1x4x8x4xf32>
    %1 = vector.shape_cast %0 : vector<1x4x8x4xf32> to vector<4x8x4xf32>
    %c0_3 = arith.constant 0 : index
    %c0_4 = arith.constant 0 : index
    %2 = vector.load %arg5[%c0_3, %c0_4] : memref<2x16xf32, #tpu.memory_space<vmem>>, vector<2x16xf32>
    %c0_5 = arith.constant 0 : index
    %c0_6 = arith.constant 0 : index
    %3 = vector.load %arg6[%c0_5, %c0_6] : memref<1x16xf32, #tpu.memory_space<vmem>>, vector<1x16xf32>
    %4 = vector.extract_strided_slice %1 {offsets = [0, 0, 0], sizes = [4, 8, 1], strides = [1, 1, 1]} : vector<4x8x4xf32> to vector<4x8x1xf32>
    %5 = vector.extract_strided_slice %2 {offsets = [0, 0], sizes = [1, 16], strides = [1, 1]} : vector<2x16xf32> to vector<1x16xf32>
    %6 = vector.shape_cast %5 : vector<1x16xf32> to vector<1x1x16xf32>
    %7 = vector.broadcast %4 : vector<4x8x1xf32> to vector<4x8x16xf32>
    %8 = vector.broadcast %6 : vector<1x1x16xf32> to vector<4x8x16xf32>
    %9 = arith.mulf %7, %8 : vector<4x8x16xf32>
    %10 = vector.extract_strided_slice %1 {offsets = [0, 0, 1], sizes = [4, 8, 1], strides = [1, 1, 1]} : vector<4x8x4xf32> to vector<4x8x1xf32>
    %11 = vector.extract_strided_slice %2 {offsets = [1, 0], sizes = [1, 16], strides = [1, 1]} : vector<2x16xf32> to vector<1x16xf32>
    %12 = vector.shape_cast %11 : vector<1x16xf32> to vector<1x1x16xf32>
    %13 = vector.broadcast %10 : vector<4x8x1xf32> to vector<4x8x16xf32>
    %14 = vector.broadcast %12 : vector<1x1x16xf32> to vector<4x8x16xf32>
    %15 = arith.mulf %13, %14 : vector<4x8x16xf32>
    %16 = arith.addf %9, %15 : vector<4x8x16xf32>
    %17 = vector.shape_cast %3 : vector<1x16xf32> to vector<1x1x16xf32>
    %18 = vector.broadcast %17 : vector<1x1x16xf32> to vector<4x8x16xf32>
    %19 = arith.addf %16, %18 : vector<4x8x16xf32>
    %cst = arith.constant 0.000000e+00 : f32
    %20 = vector.broadcast %cst : f32 to vector<4x8x16xf32>
    %21 = arith.cmpf oge, %19, %20 : vector<4x8x16xf32>
    %cst_7 = arith.constant 1.000000e-01 : f32
    %22 = vector.broadcast %cst_7 : f32 to vector<4x8x16xf32>
    %23 = arith.mulf %22, %19 : vector<4x8x16xf32>
    %24 = arith.select %21, %19, %23 : vector<4x8x16xi1>, vector<4x8x16xf32>
    %25 = vector.extract_strided_slice %24 {offsets = [0, 0, 0], sizes = [2, 8, 16], strides = [1, 1, 1]} : vector<4x8x16xf32> to vector<2x8x16xf32>
    %26 = vector.extract_strided_slice %24 {offsets = [2, 0, 0], sizes = [2, 8, 16], strides = [1, 1, 1]} : vector<4x8x16xf32> to vector<2x8x16xf32>
    %c0_8 = arith.constant 0 : index
    %c0_9 = arith.constant 0 : index
    %c0_10 = arith.constant 0 : index
    %c0_11 = arith.constant 0 : index
    %27 = vector.load %arg3[%c0_8, %c0_9, %c0_10, %c0_11] : memref<1x4x8x1xf32, #tpu.memory_space<vmem>>, vector<1x4x8x1xf32>
    %28 = vector.shape_cast %27 : vector<1x4x8x1xf32> to vector<4x8x1xf32>
    %c0_12 = arith.constant 0 : index
    %c0_13 = arith.constant 0 : index
    %c0_14 = arith.constant 0 : index
    %c0_15 = arith.constant 0 : index
    %29 = vector.load %arg4[%c0_12, %c0_13, %c0_14, %c0_15] : memref<1x4x1x8xf32, #tpu.memory_space<vmem>>, vector<1x4x1x8xf32>
    %30 = vector.shape_cast %29 : vector<1x4x1x8xf32> to vector<4x1x8xf32>
    %31 = vector.extract_strided_slice %28 {offsets = [0, 0, 0], sizes = [2, 8, 1], strides = [1, 1, 1]} : vector<4x8x1xf32> to vector<2x8x1xf32>
    %32 = vector.extract_strided_slice %28 {offsets = [2, 0, 0], sizes = [2, 8, 1], strides = [1, 1, 1]} : vector<4x8x1xf32> to vector<2x8x1xf32>
    %33 = vector.extract_strided_slice %30 {offsets = [0, 0, 0], sizes = [2, 1, 8], strides = [1, 1, 1]} : vector<4x1x8xf32> to vector<2x1x8xf32>
    %34 = vector.extract_strided_slice %30 {offsets = [2, 0, 0], sizes = [2, 1, 8], strides = [1, 1, 1]} : vector<4x1x8xf32> to vector<2x1x8xf32>
    %35 = vector.broadcast %31 : vector<2x8x1xf32> to vector<2x8x8xf32>
    %36 = vector.broadcast %34 : vector<2x1x8xf32> to vector<2x8x8xf32>
    %37 = arith.mulf %35, %36 : vector<2x8x8xf32>
    %38 = vector.broadcast %32 : vector<2x8x1xf32> to vector<2x8x8xf32>
    %39 = vector.broadcast %33 : vector<2x1x8xf32> to vector<2x8x8xf32>
    %40 = arith.mulf %38, %39 : vector<2x8x8xf32>
    "tpu.trace_start"() <{level = 10 : i32, message = "btk,bsk->bts"}> : () -> ()
    %cst_16 = arith.constant dense<0.000000e+00> : vector<2x8x8xf32>
    %41 = tpu.matmul %25, %26, %cst_16 {dimension_numbers = #tpu.dot_dimension_numbers<[2], [2], [1], [1], [0, 0, 0, 1, 1, 1], [0], [0]>} : vector<2x8x16xf32>, vector<2x8x16xf32>, vector<2x8x8xf32> -> vector<2x8x8xf32>
    %cst_17 = arith.constant 5.000000e-01 : f32
    "tpu.trace_stop"() : () -> ()
    %42 = vector.broadcast %cst_17 : f32 to vector<2x8x8xf32>
    %43 = arith.cmpf ogt, %37, %42 : vector<2x8x8xf32>
    %cst_18 = arith.constant -1.000000e+09 : f32
    %44 = vector.broadcast %cst_18 : f32 to vector<2x8x8xf32>
    %45 = arith.select %43, %41, %44 : vector<2x8x8xi1>, vector<2x8x8xf32>
    %cst_19 = arith.constant dense<0xFF800000> : vector<2x8xf32>
    %46 = vector.multi_reduction <maximumf>, %45, %cst_19 [2] : vector<2x8x8xf32> to vector<2x8xf32>
    %47 = vector.shape_cast %46 : vector<2x8xf32> to vector<2x8x1xf32>
    %48 = vector.broadcast %47 : vector<2x8x1xf32> to vector<2x8x8xf32>
    %49 = arith.subf %45, %48 : vector<2x8x8xf32>
    %50 = math.exp %49 : vector<2x8x8xf32>
    %cst_20 = arith.constant dense<0.000000e+00> : vector<2x8xf32>
    %51 = vector.multi_reduction <add>, %50, %cst_20 [2] : vector<2x8x8xf32> to vector<2x8xf32>
    %52 = vector.shape_cast %51 : vector<2x8xf32> to vector<2x8x1xf32>
    %53 = vector.broadcast %52 : vector<2x8x1xf32> to vector<2x8x8xf32>
    %54 = arith.divf %50, %53 : vector<2x8x8xf32>
    %55 = arith.mulf %54, %37 : vector<2x8x8xf32>
    "tpu.trace_start"() <{level = 10 : i32, message = "bts,bsk->btk"}> : () -> ()
    %cst_21 = arith.constant dense<0.000000e+00> : vector<2x8x16xf32>
    %56 = tpu.matmul %55, %26, %cst_21 {dimension_numbers = #tpu.dot_dimension_numbers<[2], [1], [1], [2], [0, 0, 0, 1, 1, 2], [0], [0]>} : vector<2x8x8xf32>, vector<2x8x16xf32>, vector<2x8x16xf32> -> vector<2x8x16xf32>
    "tpu.trace_stop"() : () -> ()
    "tpu.trace_start"() <{level = 10 : i32, message = "bsk,btk->bst"}> : () -> ()
    %cst_22 = arith.constant dense<0.000000e+00> : vector<2x8x8xf32>
    %57 = tpu.matmul %26, %25, %cst_22 {dimension_numbers = #tpu.dot_dimension_numbers<[2], [2], [1], [1], [0, 0, 0, 1, 1, 1], [0], [0]>} : vector<2x8x16xf32>, vector<2x8x16xf32>, vector<2x8x8xf32> -> vector<2x8x8xf32>
    %cst_23 = arith.constant 5.000000e-01 : f32
    "tpu.trace_stop"() : () -> ()
    %58 = vector.broadcast %cst_23 : f32 to vector<2x8x8xf32>
    %59 = arith.cmpf ogt, %40, %58 : vector<2x8x8xf32>
    %cst_24 = arith.constant -1.000000e+09 : f32
    %60 = vector.broadcast %cst_24 : f32 to vector<2x8x8xf32>
    %61 = arith.select %59, %57, %60 : vector<2x8x8xi1>, vector<2x8x8xf32>
    %cst_25 = arith.constant dense<0xFF800000> : vector<2x8xf32>
    %62 = vector.multi_reduction <maximumf>, %61, %cst_25 [2] : vector<2x8x8xf32> to vector<2x8xf32>
    %63 = vector.shape_cast %62 : vector<2x8xf32> to vector<2x8x1xf32>
    %64 = vector.broadcast %63 : vector<2x8x1xf32> to vector<2x8x8xf32>
    %65 = arith.subf %61, %64 : vector<2x8x8xf32>
    %66 = math.exp %65 : vector<2x8x8xf32>
    %cst_26 = arith.constant dense<0.000000e+00> : vector<2x8xf32>
    %67 = vector.multi_reduction <add>, %66, %cst_26 [2] : vector<2x8x8xf32> to vector<2x8xf32>
    %68 = vector.shape_cast %67 : vector<2x8xf32> to vector<2x8x1xf32>
    %69 = vector.broadcast %68 : vector<2x8x1xf32> to vector<2x8x8xf32>
    %70 = arith.divf %66, %69 : vector<2x8x8xf32>
    %71 = arith.mulf %70, %40 : vector<2x8x8xf32>
    "tpu.trace_start"() <{level = 10 : i32, message = "bst,btk->bsk"}> : () -> ()
    %cst_27 = arith.constant dense<0.000000e+00> : vector<2x8x16xf32>
    %72 = tpu.matmul %71, %25, %cst_27 {dimension_numbers = #tpu.dot_dimension_numbers<[2], [1], [1], [2], [0, 0, 0, 1, 1, 2], [0], [0]>} : vector<2x8x8xf32>, vector<2x8x16xf32>, vector<2x8x16xf32> -> vector<2x8x16xf32>
    "tpu.trace_stop"() : () -> ()
    %73 = tpu.concatenate %56, %72 in 0 : vector<2x8x16xf32>, vector<2x8x16xf32> -> vector<4x8x16xf32>
    %74 = arith.subf %24, %73 : vector<4x8x16xf32>
    %75 = tpu.concatenate %24, %74 in 2 : vector<4x8x16xf32>, vector<4x8x16xf32> -> vector<4x8x32xf32>
    %c0_28 = arith.constant 0 : index
    %c0_29 = arith.constant 0 : index
    %c0_30 = arith.constant 0 : index
    %76 = vector.load %arg2[%c0_28, %c0_29, %c0_30] : memref<1x4x1xi32, #tpu.memory_space<vmem>>, vector<1x4x1xi32>
    %77 = vector.shape_cast %76 : vector<1x4x1xi32> to vector<4x1xi32>
    %c0_31 = arith.constant 0 : index
    %c0_32 = arith.constant 0 : index
    %78 = vector.load %arg7[%c0_31, %c0_32] : memref<64x128xf32, #tpu.memory_space<vmem>>, vector<64x128xf32>
    %c0_33 = arith.constant 0 : index
    %c0_34 = arith.constant 0 : index
    %79 = vector.load %arg8[%c0_33, %c0_34] : memref<1x128xf32, #tpu.memory_space<vmem>>, vector<1x128xf32>
    %cst_35 = arith.constant 0.000000e+00 : f32
    %80 = vector.broadcast %cst_35 : f32 to vector<4x32xf32>
    %cst_36 = arith.constant 0.000000e+00 : f32
    %81 = vector.broadcast %cst_36 : f32 to vector<4x32xf32>
    %cst_37 = arith.constant 0.000000e+00 : f32
    %82 = vector.broadcast %cst_37 : f32 to vector<4x32xf32>
    %83 = vector.extract_strided_slice %75 {offsets = [0, 0, 0], sizes = [4, 1, 32], strides = [1, 1, 1]} : vector<4x8x32xf32> to vector<4x1x32xf32>
    %84 = vector.shape_cast %83 : vector<4x1x32xf32> to vector<4x32xf32>
    %85 = tpu.concatenate %84, %80 in 1 : vector<4x32xf32>, vector<4x32xf32> -> vector<4x64xf32>
    %cst_38 = arith.constant dense<0.000000e+00> : vector<4x128xf32>
    %86 = tpu.matmul %85, %78, %cst_38 {dimension_numbers = #tpu.dot_dimension_numbers<[1], [0], [0], [1], [0, 0, 1, 1], [], []>} : vector<4x64xf32>, vector<64x128xf32>, vector<4x128xf32> -> vector<4x128xf32>
    %87 = vector.broadcast %79 : vector<1x128xf32> to vector<4x128xf32>
    %88 = arith.addf %86, %87 : vector<4x128xf32>
    %89 = vector.extract_strided_slice %88 {offsets = [0, 0], sizes = [4, 32], strides = [1, 1]} : vector<4x128xf32> to vector<4x32xf32>
    %90 = arith.negf %89 : vector<4x32xf32>
    %91 = math.exp %90 : vector<4x32xf32>
    %cst_39 = arith.constant 1.000000e+00 : f32
    %92 = vector.broadcast %cst_39 : f32 to vector<4x32xf32>
    %93 = arith.addf %92, %91 : vector<4x32xf32>
    %94 = arith.divf %92, %93 : vector<4x32xf32>
    %95 = vector.extract_strided_slice %88 {offsets = [0, 32], sizes = [4, 32], strides = [1, 1]} : vector<4x128xf32> to vector<4x32xf32>
    %96 = arith.negf %95 : vector<4x32xf32>
    %97 = math.exp %96 : vector<4x32xf32>
    %cst_40 = arith.constant 1.000000e+00 : f32
    %98 = vector.broadcast %cst_40 : f32 to vector<4x32xf32>
    %99 = arith.addf %98, %97 : vector<4x32xf32>
    %100 = arith.divf %98, %99 : vector<4x32xf32>
    %101 = vector.extract_strided_slice %88 {offsets = [0, 64], sizes = [4, 32], strides = [1, 1]} : vector<4x128xf32> to vector<4x32xf32>
    %102 = math.tanh %101 : vector<4x32xf32>
    %103 = vector.extract_strided_slice %88 {offsets = [0, 96], sizes = [4, 32], strides = [1, 1]} : vector<4x128xf32> to vector<4x32xf32>
    %104 = arith.negf %103 : vector<4x32xf32>
    %105 = math.exp %104 : vector<4x32xf32>
    %cst_41 = arith.constant 1.000000e+00 : f32
    %106 = vector.broadcast %cst_41 : f32 to vector<4x32xf32>
    %107 = arith.addf %106, %105 : vector<4x32xf32>
    %108 = arith.divf %106, %107 : vector<4x32xf32>
    %109 = arith.mulf %100, %81 : vector<4x32xf32>
    %110 = arith.mulf %94, %102 : vector<4x32xf32>
    %111 = arith.addf %109, %110 : vector<4x32xf32>
    %112 = math.tanh %111 : vector<4x32xf32>
    %113 = arith.mulf %108, %112 : vector<4x32xf32>
    %c1_i32 = arith.constant 1 : i32
    %114 = vector.broadcast %c1_i32 : i32 to vector<4x1xi32>
    %115 = arith.cmpi eq, %77, %114 : vector<4x1xi32>
    %116 = vector.shape_cast %115 : vector<4x1xi1> to vector<4x1xi1>
    %117 = vector.broadcast %116 : vector<4x1xi1> to vector<4x32xi1>
    %118 = arith.select %117, %113, %82 : vector<4x32xi1>, vector<4x32xf32>
    %119 = vector.extract_strided_slice %75 {offsets = [0, 1, 0], sizes = [4, 1, 32], strides = [1, 1, 1]} : vector<4x8x32xf32> to vector<4x1x32xf32>
    %120 = vector.shape_cast %119 : vector<4x1x32xf32> to vector<4x32xf32>
    %121 = tpu.concatenate %120, %113 in 1 : vector<4x32xf32>, vector<4x32xf32> -> vector<4x64xf32>
    %cst_42 = arith.constant dense<0.000000e+00> : vector<4x128xf32>
    %122 = tpu.matmul %121, %78, %cst_42 {dimension_numbers = #tpu.dot_dimension_numbers<[1], [0], [0], [1], [0, 0, 1, 1], [], []>} : vector<4x64xf32>, vector<64x128xf32>, vector<4x128xf32> -> vector<4x128xf32>
    %123 = vector.broadcast %79 : vector<1x128xf32> to vector<4x128xf32>
    %124 = arith.addf %122, %123 : vector<4x128xf32>
    %125 = vector.extract_strided_slice %124 {offsets = [0, 0], sizes = [4, 32], strides = [1, 1]} : vector<4x128xf32> to vector<4x32xf32>
    %126 = arith.negf %125 : vector<4x32xf32>
    %127 = math.exp %126 : vector<4x32xf32>
    %cst_43 = arith.constant 1.000000e+00 : f32
    %128 = vector.broadcast %cst_43 : f32 to vector<4x32xf32>
    %129 = arith.addf %128, %127 : vector<4x32xf32>
    %130 = arith.divf %128, %129 : vector<4x32xf32>
    %131 = vector.extract_strided_slice %124 {offsets = [0, 32], sizes = [4, 32], strides = [1, 1]} : vector<4x128xf32> to vector<4x32xf32>
    %132 = arith.negf %131 : vector<4x32xf32>
    %133 = math.exp %132 : vector<4x32xf32>
    %cst_44 = arith.constant 1.000000e+00 : f32
    %134 = vector.broadcast %cst_44 : f32 to vector<4x32xf32>
    %135 = arith.addf %134, %133 : vector<4x32xf32>
    %136 = arith.divf %134, %135 : vector<4x32xf32>
    %137 = vector.extract_strided_slice %124 {offsets = [0, 64], sizes = [4, 32], strides = [1, 1]} : vector<4x128xf32> to vector<4x32xf32>
    %138 = math.tanh %137 : vector<4x32xf32>
    %139 = vector.extract_strided_slice %124 {offsets = [0, 96], sizes = [4, 32], strides = [1, 1]} : vector<4x128xf32> to vector<4x32xf32>
    %140 = arith.negf %139 : vector<4x32xf32>
    %141 = math.exp %140 : vector<4x32xf32>
    %cst_45 = arith.constant 1.000000e+00 : f32
    %142 = vector.broadcast %cst_45 : f32 to vector<4x32xf32>
    %143 = arith.addf %142, %141 : vector<4x32xf32>
    %144 = arith.divf %142, %143 : vector<4x32xf32>
    %145 = arith.mulf %136, %111 : vector<4x32xf32>
    %146 = arith.mulf %130, %138 : vector<4x32xf32>
    %147 = arith.addf %145, %146 : vector<4x32xf32>
    %148 = math.tanh %147 : vector<4x32xf32>
    %149 = arith.mulf %144, %148 : vector<4x32xf32>
    %c2_i32 = arith.constant 2 : i32
    %150 = vector.broadcast %c2_i32 : i32 to vector<4x1xi32>
    %151 = arith.cmpi eq, %77, %150 : vector<4x1xi32>
    %152 = vector.shape_cast %151 : vector<4x1xi1> to vector<4x1xi1>
    %153 = vector.broadcast %152 : vector<4x1xi1> to vector<4x32xi1>
    %154 = arith.select %153, %149, %118 : vector<4x32xi1>, vector<4x32xf32>
    %155 = vector.extract_strided_slice %75 {offsets = [0, 2, 0], sizes = [4, 1, 32], strides = [1, 1, 1]} : vector<4x8x32xf32> to vector<4x1x32xf32>
    %156 = vector.shape_cast %155 : vector<4x1x32xf32> to vector<4x32xf32>
    %157 = tpu.concatenate %156, %149 in 1 : vector<4x32xf32>, vector<4x32xf32> -> vector<4x64xf32>
    %cst_46 = arith.constant dense<0.000000e+00> : vector<4x128xf32>
    %158 = tpu.matmul %157, %78, %cst_46 {dimension_numbers = #tpu.dot_dimension_numbers<[1], [0], [0], [1], [0, 0, 1, 1], [], []>} : vector<4x64xf32>, vector<64x128xf32>, vector<4x128xf32> -> vector<4x128xf32>
    %159 = vector.broadcast %79 : vector<1x128xf32> to vector<4x128xf32>
    %160 = arith.addf %158, %159 : vector<4x128xf32>
    %161 = vector.extract_strided_slice %160 {offsets = [0, 0], sizes = [4, 32], strides = [1, 1]} : vector<4x128xf32> to vector<4x32xf32>
    %162 = arith.negf %161 : vector<4x32xf32>
    %163 = math.exp %162 : vector<4x32xf32>
    %cst_47 = arith.constant 1.000000e+00 : f32
    %164 = vector.broadcast %cst_47 : f32 to vector<4x32xf32>
    %165 = arith.addf %164, %163 : vector<4x32xf32>
    %166 = arith.divf %164, %165 : vector<4x32xf32>
    %167 = vector.extract_strided_slice %160 {offsets = [0, 32], sizes = [4, 32], strides = [1, 1]} : vector<4x128xf32> to vector<4x32xf32>
    %168 = arith.negf %167 : vector<4x32xf32>
    %169 = math.exp %168 : vector<4x32xf32>
    %cst_48 = arith.constant 1.000000e+00 : f32
    %170 = vector.broadcast %cst_48 : f32 to vector<4x32xf32>
    %171 = arith.addf %170, %169 : vector<4x32xf32>
    %172 = arith.divf %170, %171 : vector<4x32xf32>
    %173 = vector.extract_strided_slice %160 {offsets = [0, 64], sizes = [4, 32], strides = [1, 1]} : vector<4x128xf32> to vector<4x32xf32>
    %174 = math.tanh %173 : vector<4x32xf32>
    %175 = vector.extract_strided_slice %160 {offsets = [0, 96], sizes = [4, 32], strides = [1, 1]} : vector<4x128xf32> to vector<4x32xf32>
    %176 = arith.negf %175 : vector<4x32xf32>
    %177 = math.exp %176 : vector<4x32xf32>
    %cst_49 = arith.constant 1.000000e+00 : f32
    %178 = vector.broadcast %cst_49 : f32 to vector<4x32xf32>
    %179 = arith.addf %178, %177 : vector<4x32xf32>
    %180 = arith.divf %178, %179 : vector<4x32xf32>
    %181 = arith.mulf %172, %147 : vector<4x32xf32>
    %182 = arith.mulf %166, %174 : vector<4x32xf32>
    %183 = arith.addf %181, %182 : vector<4x32xf32>
    %184 = math.tanh %183 : vector<4x32xf32>
    %185 = arith.mulf %180, %184 : vector<4x32xf32>
    %c3_i32 = arith.constant 3 : i32
    %186 = vector.broadcast %c3_i32 : i32 to vector<4x1xi32>
    %187 = arith.cmpi eq, %77, %186 : vector<4x1xi32>
    %188 = vector.shape_cast %187 : vector<4x1xi1> to vector<4x1xi1>
    %189 = vector.broadcast %188 : vector<4x1xi1> to vector<4x32xi1>
    %190 = arith.select %189, %185, %154 : vector<4x32xi1>, vector<4x32xf32>
    %191 = vector.extract_strided_slice %75 {offsets = [0, 3, 0], sizes = [4, 1, 32], strides = [1, 1, 1]} : vector<4x8x32xf32> to vector<4x1x32xf32>
    %192 = vector.shape_cast %191 : vector<4x1x32xf32> to vector<4x32xf32>
    %193 = tpu.concatenate %192, %185 in 1 : vector<4x32xf32>, vector<4x32xf32> -> vector<4x64xf32>
    %cst_50 = arith.constant dense<0.000000e+00> : vector<4x128xf32>
    %194 = tpu.matmul %193, %78, %cst_50 {dimension_numbers = #tpu.dot_dimension_numbers<[1], [0], [0], [1], [0, 0, 1, 1], [], []>} : vector<4x64xf32>, vector<64x128xf32>, vector<4x128xf32> -> vector<4x128xf32>
    %195 = vector.broadcast %79 : vector<1x128xf32> to vector<4x128xf32>
    %196 = arith.addf %194, %195 : vector<4x128xf32>
    %197 = vector.extract_strided_slice %196 {offsets = [0, 0], sizes = [4, 32], strides = [1, 1]} : vector<4x128xf32> to vector<4x32xf32>
    %198 = arith.negf %197 : vector<4x32xf32>
    %199 = math.exp %198 : vector<4x32xf32>
    %cst_51 = arith.constant 1.000000e+00 : f32
    %200 = vector.broadcast %cst_51 : f32 to vector<4x32xf32>
    %201 = arith.addf %200, %199 : vector<4x32xf32>
    %202 = arith.divf %200, %201 : vector<4x32xf32>
    %203 = vector.extract_strided_slice %196 {offsets = [0, 32], sizes = [4, 32], strides = [1, 1]} : vector<4x128xf32> to vector<4x32xf32>
    %204 = arith.negf %203 : vector<4x32xf32>
    %205 = math.exp %204 : vector<4x32xf32>
    %cst_52 = arith.constant 1.000000e+00 : f32
    %206 = vector.broadcast %cst_52 : f32 to vector<4x32xf32>
    %207 = arith.addf %206, %205 : vector<4x32xf32>
    %208 = arith.divf %206, %207 : vector<4x32xf32>
    %209 = vector.extract_strided_slice %196 {offsets = [0, 64], sizes = [4, 32], strides = [1, 1]} : vector<4x128xf32> to vector<4x32xf32>
    %210 = math.tanh %209 : vector<4x32xf32>
    %211 = vector.extract_strided_slice %196 {offsets = [0, 96], sizes = [4, 32], strides = [1, 1]} : vector<4x128xf32> to vector<4x32xf32>
    %212 = arith.negf %211 : vector<4x32xf32>
    %213 = math.exp %212 : vector<4x32xf32>
    %cst_53 = arith.constant 1.000000e+00 : f32
    %214 = vector.broadcast %cst_53 : f32 to vector<4x32xf32>
    %215 = arith.addf %214, %213 : vector<4x32xf32>
    %216 = arith.divf %214, %215 : vector<4x32xf32>
    %217 = arith.mulf %208, %183 : vector<4x32xf32>
    %218 = arith.mulf %202, %210 : vector<4x32xf32>
    %219 = arith.addf %217, %218 : vector<4x32xf32>
    %220 = math.tanh %219 : vector<4x32xf32>
    %221 = arith.mulf %216, %220 : vector<4x32xf32>
    %c4_i32 = arith.constant 4 : i32
    %222 = vector.broadcast %c4_i32 : i32 to vector<4x1xi32>
    %223 = arith.cmpi eq, %77, %222 : vector<4x1xi32>
    %224 = vector.shape_cast %223 : vector<4x1xi1> to vector<4x1xi1>
    %225 = vector.broadcast %224 : vector<4x1xi1> to vector<4x32xi1>
    %226 = arith.select %225, %221, %190 : vector<4x32xi1>, vector<4x32xf32>
    %227 = vector.extract_strided_slice %75 {offsets = [0, 4, 0], sizes = [4, 1, 32], strides = [1, 1, 1]} : vector<4x8x32xf32> to vector<4x1x32xf32>
    %228 = vector.shape_cast %227 : vector<4x1x32xf32> to vector<4x32xf32>
    %229 = tpu.concatenate %228, %221 in 1 : vector<4x32xf32>, vector<4x32xf32> -> vector<4x64xf32>
    %cst_54 = arith.constant dense<0.000000e+00> : vector<4x128xf32>
    %230 = tpu.matmul %229, %78, %cst_54 {dimension_numbers = #tpu.dot_dimension_numbers<[1], [0], [0], [1], [0, 0, 1, 1], [], []>} : vector<4x64xf32>, vector<64x128xf32>, vector<4x128xf32> -> vector<4x128xf32>
    %231 = vector.broadcast %79 : vector<1x128xf32> to vector<4x128xf32>
    %232 = arith.addf %230, %231 : vector<4x128xf32>
    %233 = vector.extract_strided_slice %232 {offsets = [0, 0], sizes = [4, 32], strides = [1, 1]} : vector<4x128xf32> to vector<4x32xf32>
    %234 = arith.negf %233 : vector<4x32xf32>
    %235 = math.exp %234 : vector<4x32xf32>
    %cst_55 = arith.constant 1.000000e+00 : f32
    %236 = vector.broadcast %cst_55 : f32 to vector<4x32xf32>
    %237 = arith.addf %236, %235 : vector<4x32xf32>
    %238 = arith.divf %236, %237 : vector<4x32xf32>
    %239 = vector.extract_strided_slice %232 {offsets = [0, 32], sizes = [4, 32], strides = [1, 1]} : vector<4x128xf32> to vector<4x32xf32>
    %240 = arith.negf %239 : vector<4x32xf32>
    %241 = math.exp %240 : vector<4x32xf32>
    %cst_56 = arith.constant 1.000000e+00 : f32
    %242 = vector.broadcast %cst_56 : f32 to vector<4x32xf32>
    %243 = arith.addf %242, %241 : vector<4x32xf32>
    %244 = arith.divf %242, %243 : vector<4x32xf32>
    %245 = vector.extract_strided_slice %232 {offsets = [0, 64], sizes = [4, 32], strides = [1, 1]} : vector<4x128xf32> to vector<4x32xf32>
    %246 = math.tanh %245 : vector<4x32xf32>
    %247 = vector.extract_strided_slice %232 {offsets = [0, 96], sizes = [4, 32], strides = [1, 1]} : vector<4x128xf32> to vector<4x32xf32>
    %248 = arith.negf %247 : vector<4x32xf32>
    %249 = math.exp %248 : vector<4x32xf32>
    %cst_57 = arith.constant 1.000000e+00 : f32
    %250 = vector.broadcast %cst_57 : f32 to vector<4x32xf32>
    %251 = arith.addf %250, %249 : vector<4x32xf32>
    %252 = arith.divf %250, %251 : vector<4x32xf32>
    %253 = arith.mulf %244, %219 : vector<4x32xf32>
    %254 = arith.mulf %238, %246 : vector<4x32xf32>
    %255 = arith.addf %253, %254 : vector<4x32xf32>
    %256 = math.tanh %255 : vector<4x32xf32>
    %257 = arith.mulf %252, %256 : vector<4x32xf32>
    %c5_i32 = arith.constant 5 : i32
    %258 = vector.broadcast %c5_i32 : i32 to vector<4x1xi32>
    %259 = arith.cmpi eq, %77, %258 : vector<4x1xi32>
    %260 = vector.shape_cast %259 : vector<4x1xi1> to vector<4x1xi1>
    %261 = vector.broadcast %260 : vector<4x1xi1> to vector<4x32xi1>
    %262 = arith.select %261, %257, %226 : vector<4x32xi1>, vector<4x32xf32>
    %263 = vector.extract_strided_slice %75 {offsets = [0, 5, 0], sizes = [4, 1, 32], strides = [1, 1, 1]} : vector<4x8x32xf32> to vector<4x1x32xf32>
    %264 = vector.shape_cast %263 : vector<4x1x32xf32> to vector<4x32xf32>
    %265 = tpu.concatenate %264, %257 in 1 : vector<4x32xf32>, vector<4x32xf32> -> vector<4x64xf32>
    %cst_58 = arith.constant dense<0.000000e+00> : vector<4x128xf32>
    %266 = tpu.matmul %265, %78, %cst_58 {dimension_numbers = #tpu.dot_dimension_numbers<[1], [0], [0], [1], [0, 0, 1, 1], [], []>} : vector<4x64xf32>, vector<64x128xf32>, vector<4x128xf32> -> vector<4x128xf32>
    %267 = vector.broadcast %79 : vector<1x128xf32> to vector<4x128xf32>
    %268 = arith.addf %266, %267 : vector<4x128xf32>
    %269 = vector.extract_strided_slice %268 {offsets = [0, 0], sizes = [4, 32], strides = [1, 1]} : vector<4x128xf32> to vector<4x32xf32>
    %270 = arith.negf %269 : vector<4x32xf32>
    %271 = math.exp %270 : vector<4x32xf32>
    %cst_59 = arith.constant 1.000000e+00 : f32
    %272 = vector.broadcast %cst_59 : f32 to vector<4x32xf32>
    %273 = arith.addf %272, %271 : vector<4x32xf32>
    %274 = arith.divf %272, %273 : vector<4x32xf32>
    %275 = vector.extract_strided_slice %268 {offsets = [0, 32], sizes = [4, 32], strides = [1, 1]} : vector<4x128xf32> to vector<4x32xf32>
    %276 = arith.negf %275 : vector<4x32xf32>
    %277 = math.exp %276 : vector<4x32xf32>
    %cst_60 = arith.constant 1.000000e+00 : f32
    %278 = vector.broadcast %cst_60 : f32 to vector<4x32xf32>
    %279 = arith.addf %278, %277 : vector<4x32xf32>
    %280 = arith.divf %278, %279 : vector<4x32xf32>
    %281 = vector.extract_strided_slice %268 {offsets = [0, 64], sizes = [4, 32], strides = [1, 1]} : vector<4x128xf32> to vector<4x32xf32>
    %282 = math.tanh %281 : vector<4x32xf32>
    %283 = vector.extract_strided_slice %268 {offsets = [0, 96], sizes = [4, 32], strides = [1, 1]} : vector<4x128xf32> to vector<4x32xf32>
    %284 = arith.negf %283 : vector<4x32xf32>
    %285 = math.exp %284 : vector<4x32xf32>
    %cst_61 = arith.constant 1.000000e+00 : f32
    %286 = vector.broadcast %cst_61 : f32 to vector<4x32xf32>
    %287 = arith.addf %286, %285 : vector<4x32xf32>
    %288 = arith.divf %286, %287 : vector<4x32xf32>
    %289 = arith.mulf %280, %255 : vector<4x32xf32>
    %290 = arith.mulf %274, %282 : vector<4x32xf32>
    %291 = arith.addf %289, %290 : vector<4x32xf32>
    %292 = math.tanh %291 : vector<4x32xf32>
    %293 = arith.mulf %288, %292 : vector<4x32xf32>
    %c6_i32 = arith.constant 6 : i32
    %294 = vector.broadcast %c6_i32 : i32 to vector<4x1xi32>
    %295 = arith.cmpi eq, %77, %294 : vector<4x1xi32>
    %296 = vector.shape_cast %295 : vector<4x1xi1> to vector<4x1xi1>
    %297 = vector.broadcast %296 : vector<4x1xi1> to vector<4x32xi1>
    %298 = arith.select %297, %293, %262 : vector<4x32xi1>, vector<4x32xf32>
    %299 = vector.extract_strided_slice %75 {offsets = [0, 6, 0], sizes = [4, 1, 32], strides = [1, 1, 1]} : vector<4x8x32xf32> to vector<4x1x32xf32>
    %300 = vector.shape_cast %299 : vector<4x1x32xf32> to vector<4x32xf32>
    %301 = tpu.concatenate %300, %293 in 1 : vector<4x32xf32>, vector<4x32xf32> -> vector<4x64xf32>
    %cst_62 = arith.constant dense<0.000000e+00> : vector<4x128xf32>
    %302 = tpu.matmul %301, %78, %cst_62 {dimension_numbers = #tpu.dot_dimension_numbers<[1], [0], [0], [1], [0, 0, 1, 1], [], []>} : vector<4x64xf32>, vector<64x128xf32>, vector<4x128xf32> -> vector<4x128xf32>
    %303 = vector.broadcast %79 : vector<1x128xf32> to vector<4x128xf32>
    %304 = arith.addf %302, %303 : vector<4x128xf32>
    %305 = vector.extract_strided_slice %304 {offsets = [0, 0], sizes = [4, 32], strides = [1, 1]} : vector<4x128xf32> to vector<4x32xf32>
    %306 = arith.negf %305 : vector<4x32xf32>
    %307 = math.exp %306 : vector<4x32xf32>
    %cst_63 = arith.constant 1.000000e+00 : f32
    %308 = vector.broadcast %cst_63 : f32 to vector<4x32xf32>
    %309 = arith.addf %308, %307 : vector<4x32xf32>
    %310 = arith.divf %308, %309 : vector<4x32xf32>
    %311 = vector.extract_strided_slice %304 {offsets = [0, 32], sizes = [4, 32], strides = [1, 1]} : vector<4x128xf32> to vector<4x32xf32>
    %312 = arith.negf %311 : vector<4x32xf32>
    %313 = math.exp %312 : vector<4x32xf32>
    %cst_64 = arith.constant 1.000000e+00 : f32
    %314 = vector.broadcast %cst_64 : f32 to vector<4x32xf32>
    %315 = arith.addf %314, %313 : vector<4x32xf32>
    %316 = arith.divf %314, %315 : vector<4x32xf32>
    %317 = vector.extract_strided_slice %304 {offsets = [0, 64], sizes = [4, 32], strides = [1, 1]} : vector<4x128xf32> to vector<4x32xf32>
    %318 = math.tanh %317 : vector<4x32xf32>
    %319 = vector.extract_strided_slice %304 {offsets = [0, 96], sizes = [4, 32], strides = [1, 1]} : vector<4x128xf32> to vector<4x32xf32>
    %320 = arith.negf %319 : vector<4x32xf32>
    %321 = math.exp %320 : vector<4x32xf32>
    %cst_65 = arith.constant 1.000000e+00 : f32
    %322 = vector.broadcast %cst_65 : f32 to vector<4x32xf32>
    %323 = arith.addf %322, %321 : vector<4x32xf32>
    %324 = arith.divf %322, %323 : vector<4x32xf32>
    %325 = arith.mulf %316, %291 : vector<4x32xf32>
    %326 = arith.mulf %310, %318 : vector<4x32xf32>
    %327 = arith.addf %325, %326 : vector<4x32xf32>
    %328 = math.tanh %327 : vector<4x32xf32>
    %329 = arith.mulf %324, %328 : vector<4x32xf32>
    %c7_i32 = arith.constant 7 : i32
    %330 = vector.broadcast %c7_i32 : i32 to vector<4x1xi32>
    %331 = arith.cmpi eq, %77, %330 : vector<4x1xi32>
    %332 = vector.shape_cast %331 : vector<4x1xi1> to vector<4x1xi1>
    %333 = vector.broadcast %332 : vector<4x1xi1> to vector<4x32xi1>
    %334 = arith.select %333, %329, %298 : vector<4x32xi1>, vector<4x32xf32>
    %335 = vector.extract_strided_slice %75 {offsets = [0, 7, 0], sizes = [4, 1, 32], strides = [1, 1, 1]} : vector<4x8x32xf32> to vector<4x1x32xf32>
    %336 = vector.shape_cast %335 : vector<4x1x32xf32> to vector<4x32xf32>
    %337 = tpu.concatenate %336, %329 in 1 : vector<4x32xf32>, vector<4x32xf32> -> vector<4x64xf32>
    %cst_66 = arith.constant dense<0.000000e+00> : vector<4x128xf32>
    %338 = tpu.matmul %337, %78, %cst_66 {dimension_numbers = #tpu.dot_dimension_numbers<[1], [0], [0], [1], [0, 0, 1, 1], [], []>} : vector<4x64xf32>, vector<64x128xf32>, vector<4x128xf32> -> vector<4x128xf32>
    %339 = vector.broadcast %79 : vector<1x128xf32> to vector<4x128xf32>
    %340 = arith.addf %338, %339 : vector<4x128xf32>
    %341 = vector.extract_strided_slice %340 {offsets = [0, 0], sizes = [4, 32], strides = [1, 1]} : vector<4x128xf32> to vector<4x32xf32>
    %342 = arith.negf %341 : vector<4x32xf32>
    %343 = math.exp %342 : vector<4x32xf32>
    %cst_67 = arith.constant 1.000000e+00 : f32
    %344 = vector.broadcast %cst_67 : f32 to vector<4x32xf32>
    %345 = arith.addf %344, %343 : vector<4x32xf32>
    %346 = arith.divf %344, %345 : vector<4x32xf32>
    %347 = vector.extract_strided_slice %340 {offsets = [0, 32], sizes = [4, 32], strides = [1, 1]} : vector<4x128xf32> to vector<4x32xf32>
    %348 = arith.negf %347 : vector<4x32xf32>
    %349 = math.exp %348 : vector<4x32xf32>
    %cst_68 = arith.constant 1.000000e+00 : f32
    %350 = vector.broadcast %cst_68 : f32 to vector<4x32xf32>
    %351 = arith.addf %350, %349 : vector<4x32xf32>
    %352 = arith.divf %350, %351 : vector<4x32xf32>
    %353 = vector.extract_strided_slice %340 {offsets = [0, 64], sizes = [4, 32], strides = [1, 1]} : vector<4x128xf32> to vector<4x32xf32>
    %354 = math.tanh %353 : vector<4x32xf32>
    %355 = vector.extract_strided_slice %340 {offsets = [0, 96], sizes = [4, 32], strides = [1, 1]} : vector<4x128xf32> to vector<4x32xf32>
    %356 = arith.negf %355 : vector<4x32xf32>
    %357 = math.exp %356 : vector<4x32xf32>
    %cst_69 = arith.constant 1.000000e+00 : f32
    %358 = vector.broadcast %cst_69 : f32 to vector<4x32xf32>
    %359 = arith.addf %358, %357 : vector<4x32xf32>
    %360 = arith.divf %358, %359 : vector<4x32xf32>
    %361 = arith.mulf %352, %327 : vector<4x32xf32>
    %362 = arith.mulf %346, %354 : vector<4x32xf32>
    %363 = arith.addf %361, %362 : vector<4x32xf32>
    %364 = math.tanh %363 : vector<4x32xf32>
    %365 = arith.mulf %360, %364 : vector<4x32xf32>
    %c8_i32 = arith.constant 8 : i32
    %366 = vector.broadcast %c8_i32 : i32 to vector<4x1xi32>
    %367 = arith.cmpi eq, %77, %366 : vector<4x1xi32>
    %368 = vector.shape_cast %367 : vector<4x1xi1> to vector<4x1xi1>
    %369 = vector.broadcast %368 : vector<4x1xi1> to vector<4x32xi1>
    %370 = arith.select %369, %365, %334 : vector<4x32xi1>, vector<4x32xf32>
    %c0_70 = arith.constant 0 : index
    %c0_71 = arith.constant 0 : index
    %371 = vector.load %arg9[%c0_70, %c0_71] : memref<32x96xf32, #tpu.memory_space<vmem>>, vector<32x96xf32>
    %cst_72 = arith.constant dense<0.000000e+00> : vector<4x96xf32>
    %372 = tpu.matmul %370, %371, %cst_72 {dimension_numbers = #tpu.dot_dimension_numbers<[1], [0], [0], [1], [0, 0, 1, 1], [], []>} : vector<4x32xf32>, vector<32x96xf32>, vector<4x96xf32> -> vector<4x96xf32>
    %c0_73 = arith.constant 0 : index
    %c0_74 = arith.constant 0 : index
    %373 = vector.load %arg10[%c0_73, %c0_74] : memref<1x96xf32, #tpu.memory_space<vmem>>, vector<1x96xf32>
    %374 = vector.broadcast %373 : vector<1x96xf32> to vector<4x96xf32>
    %375 = arith.addf %372, %374 : vector<4x96xf32>
    %376 = vector.extract_strided_slice %375 {offsets = [0, 0], sizes = [4, 32], strides = [1, 1]} : vector<4x96xf32> to vector<4x32xf32>
    %377 = arith.negf %376 : vector<4x32xf32>
    %378 = math.exp %377 : vector<4x32xf32>
    %cst_75 = arith.constant 1.000000e+00 : f32
    %379 = vector.broadcast %cst_75 : f32 to vector<4x32xf32>
    %380 = arith.addf %379, %378 : vector<4x32xf32>
    %381 = arith.divf %379, %380 : vector<4x32xf32>
    %382 = vector.extract_strided_slice %375 {offsets = [0, 32], sizes = [4, 32], strides = [1, 1]} : vector<4x96xf32> to vector<4x32xf32>
    %cst_76 = arith.constant 0.000000e+00 : f32
    %383 = vector.broadcast %cst_76 : f32 to vector<4x32xf32>
    %384 = arith.cmpf oge, %382, %383 : vector<4x32xf32>
    %cst_77 = arith.constant 1.000000e-01 : f32
    %385 = vector.broadcast %cst_77 : f32 to vector<4x32xf32>
    %386 = arith.mulf %385, %382 : vector<4x32xf32>
    %387 = arith.select %384, %382, %386 : vector<4x32xi1>, vector<4x32xf32>
    %388 = arith.mulf %381, %387 : vector<4x32xf32>
    %389 = vector.extract_strided_slice %375 {offsets = [0, 64], sizes = [4, 32], strides = [1, 1]} : vector<4x96xf32> to vector<4x32xf32>
    %390 = arith.negf %389 : vector<4x32xf32>
    %391 = math.exp %390 : vector<4x32xf32>
    %cst_78 = arith.constant 1.000000e+00 : f32
    %392 = vector.broadcast %cst_78 : f32 to vector<4x32xf32>
    %393 = arith.addf %392, %391 : vector<4x32xf32>
    %394 = arith.divf %392, %393 : vector<4x32xf32>
    %cst_79 = arith.constant 0.000000e+00 : f32
    %395 = vector.broadcast %cst_79 : f32 to vector<4x32xf32>
    %396 = arith.cmpf oge, %388, %395 : vector<4x32xf32>
    %cst_80 = arith.constant 1.000000e-01 : f32
    %397 = vector.broadcast %cst_80 : f32 to vector<4x32xf32>
    %398 = arith.mulf %397, %388 : vector<4x32xf32>
    %399 = arith.select %396, %388, %398 : vector<4x32xi1>, vector<4x32xf32>
    %400 = arith.mulf %394, %399 : vector<4x32xf32>
    %401 = arith.addf %370, %400 : vector<4x32xf32>
    %402 = vector.extract_strided_slice %401 {offsets = [0, 0], sizes = [2, 32], strides = [1, 1]} : vector<4x32xf32> to vector<2x32xf32>
    %c0_81 = arith.constant 0 : index
    %c0_82 = arith.constant 0 : index
    %c0_83 = arith.constant 0 : index
    %403 = vector.load %arg11[%c0_81, %c0_82, %c0_83] : memref<1x2x32xf32, #tpu.memory_space<vmem>>, vector<1x2x32xf32>
    %404 = vector.shape_cast %403 : vector<1x2x32xf32> to vector<2x32xf32>
    %405 = vector.shape_cast %402 : vector<2x32xf32> to vector<1x2x32xf32>
    tpu.vector_store %arg11[%c0_81, %c0_82, %c0_83], %405 {strides = array<i32>} : memref<1x2x32xf32, #tpu.memory_space<vmem>>, vector<1x2x32xf32>,
    %406 = vector.extract_strided_slice %370 {offsets = [2, 0], sizes = [2, 32], strides = [1, 1]} : vector<4x32xf32> to vector<2x32xf32>
    %c0_84 = arith.constant 0 : index
    %c0_85 = arith.constant 0 : index
    %c0_86 = arith.constant 0 : index
    %407 = vector.load %arg12[%c0_84, %c0_85, %c0_86] : memref<1x2x32xf32, #tpu.memory_space<vmem>>, vector<1x2x32xf32>
    %408 = vector.shape_cast %407 : vector<1x2x32xf32> to vector<2x32xf32>
    %409 = vector.shape_cast %406 : vector<2x32xf32> to vector<1x2x32xf32>
    tpu.vector_store %arg12[%c0_84, %c0_85, %c0_86], %409 {strides = array<i32>} : memref<1x2x32xf32, #tpu.memory_space<vmem>>, vector<1x2x32xf32>,
    return
  }
  func.func @transform_0(%arg0: i32) -> (i32, i32, i32, i32) {
    %c0_i32 = arith.constant 0 : i32
    %c0_i32_0 = arith.constant 0 : i32
    %c0_i32_1 = arith.constant 0 : i32
    %c0_i32_2 = arith.constant 0 : i32
    return %arg0, %c0_i32, %c0_i32_0, %c0_i32_1 : i32, i32, i32, i32
  }
  func.func @transform_1(%arg0: i32) -> (i32, i32, i32) {
    %c0_i32 = arith.constant 0 : i32
    %c0_i32_0 = arith.constant 0 : i32
    %c0_i32_1 = arith.constant 0 : i32
    return %arg0, %c0_i32, %c0_i32_0 : i32, i32, i32
  }
  func.func @transform_2(%arg0: i32) -> (i32, i32, i32, i32) {
    %c0_i32 = arith.constant 0 : i32
    %c0_i32_0 = arith.constant 0 : i32
    %c0_i32_1 = arith.constant 0 : i32
    %c0_i32_2 = arith.constant 0 : i32
    return %arg0, %c0_i32, %c0_i32_0, %c0_i32_1 : i32, i32, i32, i32
  }
  func.func @transform_3(%arg0: i32) -> (i32, i32, i32, i32) {
    %c0_i32 = arith.constant 0 : i32
    %c0_i32_0 = arith.constant 0 : i32
    %c0_i32_1 = arith.constant 0 : i32
    %c0_i32_2 = arith.constant 0 : i32
    return %arg0, %c0_i32, %c0_i32_0, %c0_i32_1 : i32, i32, i32, i32
  }
  func.func @transform_4(%arg0: i32) -> (i32, i32) {
    %c0_i32 = arith.constant 0 : i32
    %c0_i32_0 = arith.constant 0 : i32
    %c0_i32_1 = arith.constant 0 : i32
    return %c0_i32, %c0_i32_0 : i32, i32
  }
  func.func @transform_5(%arg0: i32) -> (i32, i32) {
    %c0_i32 = arith.constant 0 : i32
    %c0_i32_0 = arith.constant 0 : i32
    %c0_i32_1 = arith.constant 0 : i32
    return %c0_i32, %c0_i32_0 : i32, i32
  }
  func.func @transform_6(%arg0: i32) -> (i32, i32) {
    %c0_i32 = arith.constant 0 : i32
    %c0_i32_0 = arith.constant 0 : i32
    %c0_i32_1 = arith.constant 0 : i32
    return %c0_i32, %c0_i32_0 : i32, i32
  }
  func.func @transform_7(%arg0: i32) -> (i32, i32) {
    %c0_i32 = arith.constant 0 : i32
    %c0_i32_0 = arith.constant 0 : i32
    %c0_i32_1 = arith.constant 0 : i32
    return %c0_i32, %c0_i32_0 : i32, i32
  }
  func.func @transform_8(%arg0: i32) -> (i32, i32) {
    %c0_i32 = arith.constant 0 : i32
    %c0_i32_0 = arith.constant 0 : i32
    %c0_i32_1 = arith.constant 0 : i32
    return %c0_i32, %c0_i32_0 : i32, i32
  }
  func.func @transform_9(%arg0: i32) -> (i32, i32) {
    %c0_i32 = arith.constant 0 : i32
    %c0_i32_0 = arith.constant 0 : i32
    %c0_i32_1 = arith.constant 0 : i32
    return %c0_i32, %c0_i32_0 : i32, i32
  }
  func.func @transform_10(%arg0: i32) -> (i32, i32, i32) {
    %c0_i32 = arith.constant 0 : i32
    %c0_i32_0 = arith.constant 0 : i32
    %c0_i32_1 = arith.constant 0 : i32
    return %arg0, %c0_i32, %c0_i32_0 : i32, i32, i32
  }
  func.func @transform_11(%arg0: i32) -> (i32, i32, i32) {
    %c0_i32 = arith.constant 0 : i32
    %c0_i32_0 = arith.constant 0 : i32
    %c0_i32_1 = arith.constant 0 : i32
    return %arg0, %c0_i32, %c0_i32_0 : i32, i32, i32
  }
}

</mosaic_0001>

<bundles_post_ra>
// kernel: fwd.1
= control target key start
LH: loop header
LB: loop body
LE: loop exit
PB: predicated region body
PF: predicated region fallthrough
CT: control target
= control target key end

     0   :  { %s3095_s17 = smov 0   ;;  %s3535_s0 = inlined_call_operand.vmem [shape: f32[2,4,8,4], index: 0, kind: input, shape index: {}]   ;;  %s3536_s1 = inlined_call_operand.vmem [shape: s32[2,4,1], index: 1, kind: input, shape index: {}]   ;;  %s3537_s2 = inlined_call_operand.vmem [shape: f32[2,4,8,1], index: 2, kind: input, shape index: {}]   ;;  %s3538_s3 = inlined_call_operand.vmem [shape: f32[2,4,1,8], index: 3, kind: input, shape index: {}]   ;;  %s3539_s4 = inlined_call_operand.vmem [shape: f32[2,16], index: 4, kind: input, shape index: {}]   ;;  %s3540_s5 = inlined_call_operand.vmem [shape: f32[1,16], index: 5, kind: input, shape index: {}]   ;;  %s3541_s6 = inlined_call_operand.vmem [shape: f32[64,128], index: 6, kind: input, shape index: {}]   ;;  %s3542_s7 = inlined_call_operand.vmem [shape: f32[1,128], index: 7, kind: input, shape index: {}]   ;;  %s3543_s8 = inlined_call_operand.vmem [shape: f32[32,96], index: 8, kind: input, shape index: {}]   ;;  %s3544_s9 = inlined_call_operand.vmem [shape: f32[1,96], index: 9, kind: input, shape index: {}]   ;;  %s3545_s10 = inlined_call_operand.vmem [shape: f32[2,2,32], index: 10, kind: output, shape index: {0}]   ;;  %s3546_s11 = inlined_call_operand.vmem [shape: f32[2,2,32], index: 11, kind: output, shape index: {1}]  }
   0x1 LB: > { %s2459_s18 = sadd.s32 4294967295, %s3024_s17   ;;  %p2463_p0 = scmp.ge.s32.totalorder %s3024_s17, 1  ;;  %s3024_s17 = sphi %s3095_s17, %s22_s17  }
   0x2   : > { %p368_p1 = scmp.lt.s32.totalorder %s3024_s17, 3 }
   0x4   : > { %p369_p2 = pnand %p2463_p0, %p368_p1 }
   0x5   : > { %p424_p3 = scmp.lt.s32.totalorder (!%p369_p2), %s2459_s18, 1  ;;  %v3026_v0 = vmov (!%p369_p2), 0   ;;  %v3027_v3 = vmov (!%p369_p2), 1   ;;  %v3028_v6 = vmov (!%p369_p2), 0.0   ;;  %vm3029_vm0 = vmmov (!%p369_p2), 0   ;;  %s3030_s15 = smov (!%p369_p2), 16  }
   0x6   : > { %372 = sbr.rel (%p369_p2) target bundleno = 7906 (0x1ee2), region = 60  ;;  %2930 = vset.pattern.permute.xlu1 (!%p369_p2), %v3026_v0  ;;  %2928 = vset.pattern.permute.xlu0 (!%p369_p2), %v3026_v0  ;;  %v476_v9 = vlaneseq (!%p369_p2)  ;;  %v454_v13 = vld [vmem:[%s3539_s4] sm:$0x3] (!%p369_p2)  ;;  %vm590_vm2 = vcmask (!%p369_p2), 130048   ;;  %vm747_vm6 = vcmask (!%p369_p2), 64512   ;;  %vm1271_vm11 = vcmask (!%p369_p2), 1041409  }
   0x7   : > { %2606 = vmatprep.subr.mxu1 (!%p369_p2), %v3028_v6  ;;  %2616 = vmatprep.subr.mxu0 (!%p369_p2), %v3028_v6  ;;  %v2472_v24 = vld [vmem:[%s3540_s5] ss:$0 sm:$0xff] (!%p369_p2)  ;;  %vm1274_vm12 = vcmask (!%p369_p2), 1042434   ;;  %vm1280_vm13 = vcmask (!%p369_p2), 261120   ;;  %vm1277_vm14 = vcmask (!%p369_p2), 1043459   ;;  %vm1288_vm15 = vcmask (!%p369_p2), 523264  }
   0x8   : > { %2608 = vmatprep.mubr.msk.f32.mxu1 (!%p369_p2), %vm3029_vm0, %v3028_v6  ;;  %2618 = vmatprep.mubr.msk.f32.mxu0 (!%p369_p2), %vm3029_vm0, %v3028_v6  ;;  %v477_v10 = vshrl.u32 (!%p369_p2), %v476_v9, 7  ;;  %s3032_s20 = smov (!%p369_p2), 64   ;;  %s3033_s21 = smov (!%p369_p2), 32  }
   0xa   : > { %v478_v11 = vsub.s32 (!%p369_p2), 0, %v477_v10  ;;  %v502_v12 = vsub.s32 (!%p369_p2), 1, %v477_v10 }
   0xc   : > { %v479_v16 = vrot.slane (!%p369_p2), %v454_v13, %v478_v11  ;;  %v503_v17 = vrot.slane (!%p369_p2), %v454_v13, %v502_v12 }
   0xd   : > { %s3548_s18 = smov (!%p424_p3, %s2459_s18), 1 }
   0xe   : > { %s2511_s19 = sshll.u32 %s3548_s18, 5  ;;  %s2466_s30 = sshll.u32 %s3548_s18, 2 }
   0xf   : > { %s428_s22 = scalar_lea.vmem %s3535_s0, %s2511_s19  ;;  %s3115_s25 = scalar_lea.vmem %s3537_s2, %s2511_s19 }
  0x10   : > { %v452_v1 = vld [vmem:[%s428_s22 + $0x10] sm:$0xff]  ;;  %v450_v2 = vld [vmem:[%s428_s22] sm:$0xff]  ;;  %v453_v4 = vld [vmem:[%s428_s22 + $0x18] sm:$0xff]  ;;  %s3164_s14 = scalar_lea.vmem %s3538_s3, %s2466_s30  ;;  %s432_s24 = scalar_lea.vmem %s3536_s1, %s2466_s30 }
  0x11   : > { %468 = vperm.xlu0 %2928, %v452_v1   ;;  %458 = vperm.xlu1 %2930, %v450_v2   ;;  %v451_v5 = vld [vmem:[%s428_s22 + $0x8] sm:$0xff]  ;;  %v534_v7 = vld [vmem:[%s3115_s25] sm:$0xff]  ;;  %v536_v11 = vld [vmem:[%s3115_s25 + $0x10] sm:$0xff] }
  0x12   : > { %v535_v8 = vld [vmem:[%s3115_s25 + $0x8] sm:$0xff]  ;;  %v2473_v49 = vld [vmem:[%s3164_s14 + $0x2] ss:$0 sm:$0xff]  ;;  %v2474_v52 = vld [vmem:[%s3164_s14 + $0x3] ss:$0 sm:$0xff] }
  0x13   : > { %v537_v12 = vld [vmem:[%s3115_s25 + $0x18] sm:$0xff] }
  0x15   : > { %2929 = vset.pattern.permute.xlu0 %v3027_v3  ;;  %2931 = vset.pattern.permute.xlu1 %v3027_v3 }
  0x16   : > { %493 = vperm.xlu0 %2929, %v452_v1   ;;  %485 = vperm.xlu1 %2931, %v450_v2  }
  0x1a   : > { %497 = vperm.xlu0 %2929, %v453_v4   ;;  %2932 = vset.pattern.permute.xlu1 %v3026_v0 }
  0x1b   : > { %473 = vperm.xlu1 %2932, %v453_v4  }
  0x1e   : > { %489 = vperm.xlu0 %2929, %v451_v5  }
  0x1f   : > { %463 = vperm.xlu1 %2932, %v451_v5  }
  0x22   : > { %2933 = vset.pattern.permute.xlu0 %v3026_v0 }
  0x23   : > { %544 = vperm.xlu1 %2932, %v534_v7   ;;  %549 = vperm.xlu0 %2933, %v535_v8  }
  0x90   : > { %v459_v14 = vpop.permute.xlu1 %458  ;;  %v469_v15 = vpop.permute.xlu0 %468 }
  0x91   : > { %v480_v20 = vmul.f32 %v479_v16, %v459_v14  ;;  %v482_v21 = vmul.f32 %v479_v16, %v469_v15 }
  0x95   : > { %v494_v18 = vpop.permute.xlu0 %493  ;;  %v486_v19 = vpop.permute.xlu1 %485 }
  0x96   : > { %v506_v22 = vmul.f32 %v503_v17, %v494_v18  ;;  %v504_v23 = vmul.f32 %v503_v17, %v486_v19 }
  0x98   : > { %v510_v25 = vadd.f32 %v506_v22, %v482_v21  ;;  %v508_v26 = vadd.f32 %v504_v23, %v480_v20  ;;  %v2475_v21 = vld [vmem:[%s3164_s14] ss:$0 sm:$0xff] }
  0x99   : > { %v498_v27 = vpop.permute.xlu0 %497 }
  0x9a   : > { %v520_v28 = vadd.f32 %v2472_v24, %v510_v25  ;;  %v518_v29 = vadd.f32 %v2472_v24, %v508_v26  ;;  %v507_v30 = vmul.f32 %v503_v17, %v498_v27  ;;  %v474_v31 = vpop.permute.xlu1 %473  ;;  %v2476_v26 = vld [vmem:[%s3164_s14 + $0x1] ss:$0 sm:$0xff]  ;;  %s2470_s14 = sshll.u32 %s3548_s18, 1 }
  0x9b   : > { %v483_v32 = vmul.f32 %v479_v16, %v474_v31  ;;  %s449_s19 = scalar_lea.vmem %s3546_s11, %s2470_s14  ;;  %s445_s26 = scalar_lea.vmem %s3545_s10, %s2470_s14 }
  0x9c   : > { %v528_v33 = vmul.f32 0.1, %v520_v28  ;;  %vm524_vm1 = vcmp.ge.f32.partialorder %v520_v28, 0.0  ;;  %v526_v34 = vmul.f32 0.1, %v518_v29  ;;  %vm522_vm3 = vcmp.ge.f32.partialorder %v518_v29, 0.0 }
  0x9d   : > { %v511_v35 = vadd.f32 %v507_v30, %v483_v32  ;;  %v490_v36 = vpop.permute.xlu0 %489 }
  0x9e   : > { %v505_v37 = vmul.f32 %v503_v17, %v490_v36  ;;  %v464_v38 = vpop.permute.xlu1 %463  ;;  %v3132_v39 = vsel %vm524_vm1, %v520_v28, %v528_v33  ;;  %v3139_v44 = vsel %vm522_vm3, %v518_v29, %v526_v34  ;;  %vm1395_vm1 = vcmask 1044484  }
  0x9f   : > { %v521_v40 = vadd.f32 %v2472_v24, %v511_v35  ;;  %v481_v41 = vmul.f32 %v479_v16, %v464_v38  ;;  %2607 = vmatpush3.xpose.msk.msra.mxu1 %vm590_vm2, %v3132_v39  ;;  %2617 = vmatpush3.msra.mxu0 %v3132_v39  ;;  %vm1627_vm3 = vcmask 1046534  }
  0xa0   : > { %2611 = vmatprep.subr.mxu1 %v3028_v6  ;;  %2626 = vmatprep.subr.mxu0 %v3028_v6 }
  0xa1   : > { %v529_v42 = vmul.f32 0.1, %v521_v40  ;;  %v509_v43 = vadd.f32 %v505_v37, %v481_v41  ;;  %vm525_vm4 = vcmp.ge.f32.partialorder %v521_v40, 0.0 }
  0xa2   : > { %2609 = vmatmul.mubr.msk.f32.vlgmr.msra.gmra.mrb[0].mxu1 %vm590_vm2, %v3139_v44  ;;  %v545_v50 = vpop.permute.xlu1 %544  ;;  %v550_v53 = vpop.permute.xlu0 %549 }
  0xa3   : > { %v519_v45 = vadd.f32 %v2472_v24, %v509_v43  ;;  %v3143_v46 = vsel %vm525_vm4, %v521_v40, %v529_v42  ;;  %2613 = vmatprep.mubr.msk.f32.mxu1 %vm3029_vm0, %v3028_v6  ;;  %v564_v51 = vmul.f32 %v2473_v49, %v545_v50  ;;  %v565_v55 = vmul.f32 %v2474_v52, %v550_v53 }
  0xa4   : > { %2612 = vmatpush3.xpose.msk.msra.mxu1 %vm590_vm2, %v3143_v46  ;;  %vm1743_vm4 = vcmask 1047559  }
  0xa5   : > { %v527_v47 = vmul.f32 0.1, %v519_v45  ;;  %2621 = vmatprep.subr.mxu1 %v3028_v6  ;;  %vm523_vm5 = vcmp.ge.f32.partialorder %v519_v45, 0.0  ;;  %vm743_vm7 = vcmp.gt.f32.partialorder %v564_v51, 0.5  ;;  %vm744_vm8 = vcmp.gt.f32.partialorder %v565_v55, 0.5 }
  0xa7   : > { %v3150_v48 = vsel %vm523_vm5, %v519_v45, %v527_v47  ;;  %vm1870_vm5 = vcmask 1042432  }
  0xa8   : > { %2614 = vmatmul.mubr.msk.f32.vlgmr.msra.gmra.mrb[2].mxu1 %vm590_vm2, %v3150_v48 }
  0xa9   : > { %2622 = vmatpush3.msra.mxu1 %v3143_v46  ;;  %2623 = vmatprep.mubr.msk.f32.mxu1 %vm3029_vm0, %v3028_v6 }
  0xaa   : > { %2631 = vmatprep.subr.mxu1 %v3028_v6 }
 0x175   : > { %v663_v54 = vpop.f32.mrb[0].mxu1 }
 0x176   : > { %v745_v56 = vsel %vm743_vm7, %v663_v54, -1e+09  ;;  %v2610_v57 = vpop.f32.mrb[1].mxu1 }
 0x177   : > { %v748_v58 = vsel %vm747_vm6, %v745_v56, -inf }
 0x178   : > { %749 = vmax.xlane.f32.xlu1 %v748_v58 }
 0x17b   : > { %v739_v59 = vpop.f32.mrb[2].mxu1 }
 0x17c   : > { %v746_v60 = vsel %vm744_vm8, %v739_v59, -1e+09  ;;  %v2615_v61 = vpop.f32.mrb[3].mxu1 }
 0x17d   : > { %v751_v62 = vsel %vm747_vm6, %v746_v60, -inf }
 0x17e   : > { %752 = vmax.xlane.f32.xlu0 %v751_v62 }
 0x205   : > { %v750_v63 = vpop.xlane.xlu1 %749 }
 0x206   : > { %v754_v1 = vsub.f32 %v745_v56, %v750_v63  ;;  %v1257_v63 = vld [vmem:[%s3541_s6] sm:$0xff] }
 0x208   : > { %v756_v2 = vmul.f32 1.442695, %v754_v1  ;;  %v1258_v1 = vld [vmem:[%s3541_s6 + $0x8] sm:$0xff] }
 0x20a   : > { %2934 = vpow2.f32 %v756_v2  ;;  %v3031_v2 = vmov 0.0|0.0  }
 0x20b   : > { %v753_v3 = vpop.xlane.xlu0 %752 }
 0x20c   : > { %v755_v4 = vsub.f32 %v746_v60, %v753_v3  ;;  %v3219_v3 = vpack.c.bf16 %v1258_v1, %v1257_v63 }
 0x20e   : > { %v758_v5 = vmul.f32 1.442695, %v755_v4  ;;  %v1259_v4 = vld [vmem:[%s3541_s6 + $0x10] sm:$0xff] }
 0x210   : > { %2936 = vpow2.f32 %v758_v5  ;;  %v1260_v5 = vld [vmem:[%s3541_s6 + $0x18] sm:$0xff] }
 0x214   : > { %v2935_v7 = vpop.eup %2934 }
 0x215   : > { %v760_v8 = vsel %vm747_vm6, %v2935_v7, 0.0 }
 0x216   : > { %761 = vadd.xlane.f32.xlu1 %v760_v8  ;;  %v1261_v8 = vld [vmem:[%s3541_s6 + $0x20] sm:$0xff] }
 0x21a   : > { %v2937_v9 = vpop.eup %2936 }
 0x21b   : > { %v763_v10 = vsel %vm747_vm6, %v2937_v9, 0.0 }
 0x21c   : > { %764 = vadd.xlane.f32.xlu0 %v763_v10 }
 0x227   : > { %568 = vperm.xlu1 %2932, %v536_v11   ;;  %v1263_v11 = vld [vmem:[%s3541_s6 + $0x30] sm:$0xff] }
 0x232   : > { %573 = vperm.xlu0 %2933, %v537_v12   ;;  %v1264_v12 = vld [vmem:[%s3541_s6 + $0x38] sm:$0xff] }
 0x2a3   : > { %v762_v13 = vpop.xlane.xlu1 %761 }
 0x2a4   : > { %2938 = vrcp.f32 %v762_v13  ;;  %v3256_v13 = vpack.c.bf16 %v1264_v12, %v1263_v11 }
 0x2a7   : > { %v569_v22 = vpop.permute.xlu1 %568 }
 0x2a8   : > { %v588_v23 = vmul.f32 %v2475_v21, %v569_v22 }
 0x2a9   : > { %v765_v14 = vpop.xlane.xlu0 %764 }
 0x2aa   : > { %2940 = vrcp.f32 %v765_v14  ;;  %vm1058_vm9 = vcmp.gt.f32.partialorder %v588_v23, 0.5 }
 0x2ae   : > { %v2939_v15 = vpop.eup %2938 }
 0x2af   : > { %v767_v16 = vmul.f32 %v2939_v15, %v2935_v7  ;;  %v3232_v7 = vpack.c.bf16 %v1260_v5, %v1259_v4 }
 0x2b1   : > { %v770_v17 = vmul.f32 %v767_v16, %v564_v51  ;;  %v574_v27 = vpop.permute.xlu0 %573 }
 0x2b2   : > { %v589_v31 = vmul.f32 %v2476_v26, %v574_v27 }
 0x2b3   : > { %2619 = vmatmul.mubr.msk.f32.vlgmr.msra.gmra.mrb[0].mxu0 %vm747_vm6, %v770_v17 }
 0x2b4   : > { %v2941_v18 = vpop.eup %2940  ;;  %2627 = vmatpush3.xpose.msk.msra.mxu0 %vm590_vm2, %v3139_v44  ;;  %2628 = vmatprep.mubr.msk.f32.mxu0 %vm3029_vm0, %v3028_v6  ;;  %vm1059_vm10 = vcmp.gt.f32.partialorder %v589_v31, 0.5 }
 0x2b5   : > { %v769_v19 = vmul.f32 %v2941_v18, %v2937_v9  ;;  %2636 = vmatprep.subr.mxu0 %v3028_v6  ;;  %v1262_v9 = vld [vmem:[%s3541_s6 + $0x28] sm:$0xff] }
 0x2b6   : > { %v3243_v10 = vpack.c.bf16 %v1262_v9, %v1261_v8 }
 0x2b7   : > { %2629 = vmatmul.mubr.msk.f32.vlgmr.msra.gmra.mrb[2].mxu0 %vm590_vm2, %v3132_v39  ;;  %v771_v20 = vmul.f32 %v769_v19, %v565_v55 }
 0x2b8   : > { %2637 = vmatpush3.msra.mxu0 %v3139_v44  ;;  %2638 = vmatprep.mubr.msk.f32.mxu0 %vm3029_vm0, %v3028_v6 }
 0x2b9   : > { %2624 = vmatmul.mubr.msk.f32.vlgmr.msra.gmra.mrb[4].mxu1 %vm747_vm6, %v771_v20  ;;  %2809 = vmatprep.subr.bf16.mxu0 %v3031_v2 }
 0x2ba   : > { %2632 = vmatpush3.xpose.msk.msra.mxu1 %vm590_vm2, %v3150_v48  ;;  %2633 = vmatprep.mubr.msk.f32.mxu1 %vm3029_vm0, %v3028_v6 }
 0x2bb   : > { %2641 = vmatprep.subr.mxu1 %v3028_v6 }
 0x2bd   : > { %2634 = vmatmul.mubr.msk.f32.vlgmr.msra.gmra.mrb[6].mxu1 %vm590_vm2, %v3143_v46 }
 0x2be   : > { %2642 = vmatpush3.msra.mxu1 %v3150_v48  ;;  %2643 = vmatprep.mubr.msk.f32.mxu1 %vm3029_vm0, %v3028_v6 }
 0x2bf   : > { %2821 = vmatprep.subr.bf16.mxu1 %v3031_v2 }
 0x386   : > { %v841_v24 = vpop.f32.mrb[0].mxu0 }
 0x387   : > { %v2620_v25 = vpop.f32.mrb[1].mxu0  ;;  %v1232_v54 = vsub.f32 %v3139_v44, %v841_v24 }
 0x38a   : > { %v984_v28 = vpop.f32.mrb[2].mxu0 }
 0x38b   : > { %v1060_v29 = vsel %vm1058_vm9, %v984_v28, -1e+09  ;;  %v2630_v30 = vpop.f32.mrb[3].mxu0 }
 0x38c   : > { %v914_v32 = vpop.f32.mrb[4].mxu1  ;;  %v1062_v33 = vsel %vm747_vm6, %v1060_v29, -inf }
 0x38d   : > { %v2625_v34 = vpop.f32.mrb[5].mxu1  ;;  %1063 = vmax.xlane.f32.xlu1 %v1062_v33  ;;  %v1233_v53 = vsub.f32 %v3150_v48, %v914_v32 }
 0x390   : > { %v1054_v35 = vpop.f32.mrb[6].mxu1 }
 0x391   : > { %v1061_v36 = vsel %vm1059_vm10, %v1054_v35, -1e+09  ;;  %v2635_v37 = vpop.f32.mrb[7].mxu1 }
 0x392   : > { %v1065_v38 = vsel %vm747_vm6, %v1061_v36, -inf }
 0x393   : > { %1066 = vmax.xlane.f32.xlu0 %v1065_v38 }
 0x41a   : > { %v1064_v40 = vpop.xlane.xlu1 %1063 }
 0x41b   : > { %v1068_v41 = vsub.f32 %v1060_v29, %v1064_v40 }
 0x41d   : > { %v1070_v42 = vmul.f32 1.442695, %v1068_v41 }
 0x41f   : > { %2942 = vpow2.f32 %v1070_v42 }
 0x420   : > { %v1067_v43 = vpop.xlane.xlu0 %1066 }
 0x421   : > { %v1069_v45 = vsub.f32 %v1061_v36, %v1067_v43 }
 0x423   : > { %v1072_v47 = vmul.f32 1.442695, %v1069_v45 }
 0x425   : > { %2944 = vpow2.f32 %v1072_v47 }
 0x429   : > { %v2943_v49 = vpop.eup %2942 }
 0x42a   : > { %v1074_v50 = vsel %vm747_vm6, %v2943_v49, 0.0 }
 0x42b   : > { %1075 = vadd.xlane.f32.xlu1 %v1074_v50 }
 0x42f   : > { %v2945_v51 = vpop.eup %2944 }
 0x430   : > { %v1077_v52 = vsel %vm747_vm6, %v2945_v51, 0.0 }
 0x431   : > { %1078 = vadd.xlane.f32.xlu0 %v1077_v52 }
 0x43c   : > { %1242 = vrot.lane.b32.xlu1 %v1233_v53, %s3030_s15 }
 0x440   : > { %1240 = vrot.lane.b32.xlu1 %v1232_v54, %s3030_s15 }
 0x4b8   : > { %v1076_v55 = vpop.xlane.xlu1 %1075 }
 0x4b9   : > { %2946 = vrcp.f32 %v1076_v55 }
 0x4bc   : > { %v1243_v20 = vpop.permute.xlu1 %1242 }
 0x4bd   : > { %v1253_v24 = vsel %vm590_vm2, %v3150_v48, %v1243_v20 }
 0x4be   : > { %v1079_v56 = vpop.xlane.xlu0 %1078  ;;  %v3276_v27 = vrot.slane %v1253_v24, 7 }
 0x4bf   : > { %2948 = vrcp.f32 %v1079_v56 }
 0x4c0   : > { %v1241_v22 = vpop.permute.xlu1 %1240 }
 0x4c1   : > { %v3272_v25 = vsel %vm590_vm2, %v3139_v44, %v1241_v22 }
 0x4c2   : > { %v1393_v53 = vsel %vm1274_vm12, %v3276_v27, %v3272_v25 }
 0x4c3   : > { %v2947_v57 = vpop.eup %2946 }
 0x4c4   : > { %v1081_v58 = vmul.f32 %v2947_v57, %v2943_v49 }
 0x4c6   : > { %v1084_v59 = vmul.f32 %v1081_v58, %v588_v23 }
 0x4c8   : > { %2639 = vmatmul.mubr.msk.f32.vlgmr.msra.gmra.mrb[4].mxu0 %vm747_vm6, %v1084_v59 }
 0x4c9   : > { %v2949_v60 = vpop.eup %2948  ;;  %2662 = vmatprep.mubr.msk.f32.mxu0 %vm3029_vm0, %v3028_v6  ;;  %2811 = vmatpush3.bf16.msra.mxu0 %v3219_v3 }
 0x4ca   : > { %v1083_v61 = vmul.f32 %v2949_v60, %v2945_v51  ;;  %2812 = vmatprep.subr.bf16.mxu0 %v3031_v2 }
 0x4cc   : > { %v1085_v62 = vmul.f32 %v1083_v61, %v589_v31 }
 0x4cd   : > { %2814 = vmatpush3.bf16.msra.mxu0 %v3232_v7 }
 0x4ce   : > { %2644 = vmatmul.mubr.msk.f32.vlgmr.msra.gmra.mrb[8].mxu1 %vm747_vm6, %v1085_v62  ;;  %2815 = vmatprep.subr.bf16.mxu0 %v3031_v2  ;;  %vm1990_vm6 = vcmask 1041408  }
 0x4cf   : > { %2681 = vmatprep.mubr.msk.f32.mxu1 %vm3029_vm0, %v3028_v6  ;;  %2823 = vmatpush3.bf16.msra.mxu1 %v3219_v3 }
 0x4d0   : > { %2824 = vmatprep.subr.bf16.mxu1 %v3031_v2 }
 0x4d1   : > { %2817 = vmatpush3.bf16.msra.mxu0 %v3243_v10 }
 0x4d2   : > { %2818 = vmatprep.subr.bf16.mxu0 %v3031_v2 }
 0x4d3   : > { %2826 = vmatpush3.bf16.msra.mxu1 %v3232_v7 }
 0x4d4   : > { %2827 = vmatprep.subr.bf16.mxu1 %v3031_v2 }
 0x4d5   : > { %2820 = vmatpush3.bf16.msra.mxu0 %v3256_v13 }
 0x4d6   : > { %2833 = vmatprep.subr.bf16.mxu0 %v3031_v2 }
 0x4d7   : > { %2829 = vmatpush3.bf16.msra.mxu1 %v3243_v10 }
 0x4d8   : > { %2830 = vmatprep.subr.bf16.mxu1 %v3031_v2 }
 0x4db   : > { %2832 = vmatpush3.bf16.msra.mxu1 %v3256_v13 }
 0x4dc   : > { %2845 = vmatprep.subr.bf16.mxu1 %v3031_v2 }
 0x59b   : > { %v1155_v14 = vpop.f32.mrb[4].mxu0 }
 0x59c   : > { %v1234_v15 = vsub.f32 %v3132_v39, %v1155_v14  ;;  %v2640_v16 = vpop.f32.mrb[5].mxu0 }
 0x59e   : > { %1244 = vrot.lane.b32.xlu0 %v1234_v15, %s3030_s15 }
 0x5a1   : > { %v1228_v17 = vpop.f32.mrb[8].mxu1 }
 0x5a2   : > { %v1235_v18 = vsub.f32 %v3143_v46, %v1228_v17  ;;  %v2645_v19 = vpop.f32.mrb[9].mxu1 }
 0x5a3   : > { %v1509_v19 = vsel %vm1277_vm14, %v3276_v27, %v3272_v25 }
 0x5a4   : > { %1246 = vrot.lane.b32.xlu1 %v1235_v18, %s3030_s15 }
 0x610   : > { %v1245_v21 = vpop.permute.xlu0 %1244 }
 0x611   : > { %v1254_v23 = vsel %vm590_vm2, %v3132_v39, %v1245_v21  ;;  %v1272_v39 = vsel %vm1271_vm11, %v3276_v27, %v3272_v25 }
 0x612   : > { %v3274_v26 = vrot.slane %v1254_v23, 6 }
 0x614   : > { %v1275_v44 = vsel %vm1274_vm12, %v3274_v26, %v1272_v39  ;;  %v1394_v54 = vsel %vm1277_vm14, %v3274_v26, %v1393_v53  ;;  %v1510_v20 = vsel %vm1395_vm1, %v3274_v26, %v1509_v19 }
 0x616   : > { %v1247_v28 = vpop.permute.xlu1 %1246 }
 0x617   : > { %v1255_v29 = vsel %vm590_vm2, %v3143_v46, %v1247_v28  ;;  %v3304_v46 = vld [vmem:[%s3542_s7] ss:$0 sm:$0xff]  ;;  %vm1511_vm2 = vcmask 1045509  }
 0x618   : > { %v3280_v30 = vrot.slane %v1255_v29, 5 }
 0x61a   : > { %v1278_v48 = vsel %vm1277_vm14, %v3280_v30, %v1275_v44  ;;  %v1396_v55 = vsel %vm1395_vm1, %v3280_v30, %v1394_v54  ;;  %v1512_v21 = vsel %vm1511_vm2, %v3280_v30, %v1510_v20 }
 0x61b   : > { %v1281_v31 = vsel %vm1280_vm13, %v1278_v48, 0.0 }
 0x61c   : > { %2663 = vmatmul.mubr.msk.f32.vlgmr.msra.gmra.mrb[6].mxu0 %vm1288_vm15, %v1281_v31 }
 0x61d   : > { %2835 = vmatpush3.bf16.msra.mxu0 %v3219_v3  ;;  %2700 = vmatprep.mubr.msk.f32.mxu0 %vm3029_vm0, %v3028_v6 }
 0x61e   : > { %2836 = vmatprep.subr.bf16.mxu0 %v3031_v2 }
 0x621   : > { %2838 = vmatpush3.bf16.msra.mxu0 %v3232_v7 }
 0x622   : > { %2839 = vmatprep.subr.bf16.mxu0 %v3031_v2 }
 0x625   : > { %2841 = vmatpush3.bf16.msra.mxu0 %v3243_v10 }
 0x626   : > { %2842 = vmatprep.subr.bf16.mxu0 %v3031_v2 }
 0x629   : > { %2844 = vmatpush3.bf16.msra.mxu0 %v3256_v13 }
 0x62a   : > { %2857 = vmatprep.subr.bf16.mxu0 %v3031_v2 }
 0x6ef   : > { %v1358_v32 = vpop.f32.mrb[6].mxu0 }
 0x6f0   : > { %v1359_v33 = vadd.f32 %v3304_v46, %v1358_v32  ;;  %v2664_v34 = vpop.f32.mrb[7].mxu0 }
 0x6f2   : > { %2950 = vtanh.f32 %v1359_v33  ;;  %v2491_v36 = vmul.f32 -1.442695, %v1359_v33 }
 0x6f4   : > { %2952 = vpow2.f32 %v2491_v36 }
 0x6fc   : > { %v2951_v35 = vpop.eup %2950 }
 0x6fd   : > { %1371 = vrot.lane.b32.xlu0 %v2951_v35, %s3032_s20 }
 0x6fe   : > { %v2953_v37 = vpop.eup %2952 }
 0x6ff   : > { %v1365_v38 = vadd.f32 1.0, %v2953_v37 }
 0x701   : > { %2954 = vrcp.f32 %v1365_v38 }
 0x70b   : > { %v2955_v40 = vpop.eup %2954 }
 0x70c   : > { %v1369_v43 = vmul.f32 0.0, %v2955_v40 }
 0x76f   : > { %v1372_v41 = vpop.permute.xlu0 %1371 }
 0x770   : > { %v1374_v42 = vmul.f32 %v2955_v40, %v1372_v41 }
 0x772   : > { %1376 = vrot.lane.b32.xlu1 %v1374_v42, %s3033_s21 }
 0x7e4   : > { %v1377_v45 = vpop.permute.xlu1 %1376 }
 0x7e5   : > { %v1379_v47 = vadd.f32 %v1377_v45, %v1369_v43  ;;  %v1625_v45 = vsel %vm1395_vm1, %v3276_v27, %v3272_v25 }
 0x7e7   : > { %2956 = vtanh.f32 %v1379_v47 }
 0x7f1   : > { %v2957_v49 = vpop.eup %2956 }
 0x7f2   : > { %1382 = vrot.lane.b32.xlu0 %v2957_v49, %s3032_s20 }
 0x864   : > { %v1383_v50 = vpop.permute.xlu0 %1382 }
 0x865   : > { %v3310_v51 = vmul.f32 %v2955_v40, %v1383_v50 }
 0x867   : > { %v1399_v52 = vrot.slane %v3310_v51, 7 }
 0x869   : > { %1400 = vrot.lane.b32.xlu1 %v1399_v52, %s3032_s20 }
 0x8db   : > { %v1401_v56 = vpop.permute.xlu1 %1400 }
 0x8dc   : > { %v1403_v57 = vsel %vm1280_vm13, %v1396_v55, %v1401_v56 }
 0x8dd   : > { %v1405_v58 = vrot.slane %v1403_v57, 1 }
 0x8df   : > { %2682 = vmatmul.mubr.msk.f32.vlgmr.msra.gmra.mrb[10].mxu1 %vm1288_vm15, %v1405_v58 }
 0x8e0   : > { %2847 = vmatpush3.bf16.msra.mxu1 %v3219_v3  ;;  %2719 = vmatprep.mubr.msk.f32.mxu1 %vm3029_vm0, %v3028_v6 }
 0x8e1   : > { %2848 = vmatprep.subr.bf16.mxu1 %v3031_v2 }
 0x8e4   : > { %2850 = vmatpush3.bf16.msra.mxu1 %v3232_v7 }
 0x8e5   : > { %2851 = vmatprep.subr.bf16.mxu1 %v3031_v2 }
 0x8e8   : > { %2853 = vmatpush3.bf16.msra.mxu1 %v3243_v10 }
 0x8e9   : > { %2854 = vmatprep.subr.bf16.mxu1 %v3031_v2 }
 0x8ec   : > { %2856 = vmatpush3.bf16.msra.mxu1 %v3256_v13 }
 0x8ed   : > { %2869 = vmatprep.subr.bf16.mxu1 %v3031_v2 }
 0x9b2   : > { %v1474_v59 = vpop.f32.mrb[10].mxu1 }
 0x9b3   : > { %v1475_v60 = vadd.f32 %v3304_v46, %v1474_v59  ;;  %v2683_v61 = vpop.f32.mrb[11].mxu1 }
 0x9b5   : > { %2958 = vtanh.f32 %v1475_v60  ;;  %v2493_v63 = vmul.f32 -1.442695, %v1475_v60 }
 0x9b7   : > { %2960 = vpow2.f32 %v2493_v63 }
 0x9bf   : > { %v2959_v62 = vpop.eup %2958 }
 0x9c0   : > { %1487 = vrot.lane.b32.xlu0 %v2959_v62, %s3032_s20 }
 0x9c1   : > { %v2961_v1 = vpop.eup %2960 }
 0x9c2   : > { %v1481_v4 = vadd.f32 1.0, %v2961_v1 }
 0x9c4   : > { %2962 = vrcp.f32 %v1481_v4 }
 0x9ce   : > { %v2963_v5 = vpop.eup %2962 }
 0x9cf   : > { %v1485_v11 = vmul.f32 %v2963_v5, %v1379_v47  ;;  %v1626_v47 = vsel %vm1511_vm2, %v3274_v26, %v1625_v45 }
 0x9d0   : > { %v1628_v49 = vsel %vm1627_vm3, %v3280_v30, %v1626_v47 }
 0xa32   : > { %v1488_v8 = vpop.permute.xlu0 %1487 }
 0xa33   : > { %v1490_v9 = vmul.f32 %v2963_v5, %v1488_v8 }
 0xa35   : > { %1492 = vrot.lane.b32.xlu1 %v1490_v9, %s3033_s21 }
 0xaa7   : > { %v1493_v12 = vpop.permute.xlu1 %1492 }
 0xaa8   : > { %v1495_v14 = vadd.f32 %v1493_v12, %v1485_v11 }
 0xaaa   : > { %2964 = vtanh.f32 %v1495_v14 }
 0xab4   : > { %v2965_v15 = vpop.eup %2964 }
 0xab5   : > { %1498 = vrot.lane.b32.xlu0 %v2965_v15, %s3032_s20 }
 0xb27   : > { %v1499_v16 = vpop.permute.xlu0 %1498 }
 0xb28   : > { %v3337_v17 = vmul.f32 %v2963_v5, %v1499_v16 }
 0xb2a   : > { %v1515_v18 = vrot.slane %v3337_v17, 6 }
 0xb2c   : > { %1516 = vrot.lane.b32.xlu1 %v1515_v18, %s3032_s20 }
 0xb9e   : > { %v1517_v22 = vpop.permute.xlu1 %1516 }
 0xb9f   : > { %v1519_v23 = vsel %vm1280_vm13, %v1512_v21, %v1517_v22 }
 0xba0   : > { %v1521_v24 = vrot.slane %v1519_v23, 2 }
 0xba2   : > { %2701 = vmatmul.mubr.msk.f32.vlgmr.msra.gmra.mrb[8].mxu0 %vm1288_vm15, %v1521_v24 }
 0xba3   : > { %2859 = vmatpush3.bf16.msra.mxu0 %v3219_v3  ;;  %2738 = vmatprep.mubr.msk.f32.mxu0 %vm3029_vm0, %v3028_v6 }
 0xba4   : > { %2860 = vmatprep.subr.bf16.mxu0 %v3031_v2 }
 0xba7   : > { %2862 = vmatpush3.bf16.msra.mxu0 %v3232_v7 }
 0xba8   : > { %2863 = vmatprep.subr.bf16.mxu0 %v3031_v2 }
 0xbab   : > { %2865 = vmatpush3.bf16.msra.mxu0 %v3243_v10 }
 0xbac   : > { %2866 = vmatprep.subr.bf16.mxu0 %v3031_v2 }
 0xbaf   : > { %2868 = vmatpush3.bf16.msra.mxu0 %v3256_v13 }
 0xbb0   : > { %2881 = vmatprep.subr.bf16.mxu0 %v3031_v2 }
 0xc75   : > { %v1590_v28 = vpop.f32.mrb[8].mxu0 }
 0xc76   : > { %v1591_v29 = vadd.f32 %v3304_v46, %v1590_v28  ;;  %v2702_v39 = vpop.f32.mrb[9].mxu0 }
 0xc78   : > { %2966 = vtanh.f32 %v1591_v29  ;;  %v2495_v48 = vmul.f32 -1.442695, %v1591_v29 }
 0xc7a   : > { %2968 = vpow2.f32 %v2495_v48 }
 0xc82   : > { %v2967_v44 = vpop.eup %2966 }
 0xc83   : > { %1603 = vrot.lane.b32.xlu0 %v2967_v44, %s3032_s20 }
 0xc84   : > { %v2969_v31 = vpop.eup %2968 }
 0xc85   : > { %v1597_v32 = vadd.f32 1.0, %v2969_v31 }
 0xc87   : > { %2970 = vrcp.f32 %v1597_v32 }
 0xc91   : > { %v2971_v33 = vpop.eup %2970 }
 0xc92   : > { %v1601_v36 = vmul.f32 %v2971_v33, %v1495_v14  ;;  %v1741_v14 = vsel %vm1511_vm2, %v3276_v27, %v3272_v25 }
 0xc93   : > { %v1742_v15 = vsel %vm1627_vm3, %v3274_v26, %v1741_v14 }
 0xc94   : > { %v1744_v16 = vsel %vm1743_vm4, %v3280_v30, %v1742_v15 }
 0xcf5   : > { %v1604_v34 = vpop.permute.xlu0 %1603 }
 0xcf6   : > { %v1606_v35 = vmul.f32 %v2971_v33, %v1604_v34 }
 0xcf8   : > { %1608 = vrot.lane.b32.xlu1 %v1606_v35, %s3033_s21 }
 0xd6a   : > { %v1609_v37 = vpop.permute.xlu1 %1608 }
 0xd6b   : > { %v1611_v38 = vadd.f32 %v1609_v37, %v1601_v36 }
 0xd6d   : > { %2972 = vtanh.f32 %v1611_v38 }
 0xd77   : > { %v2973_v40 = vpop.eup %2972 }
 0xd78   : > { %1614 = vrot.lane.b32.xlu0 %v2973_v40, %s3032_s20  ;;  %v1857_v40 = vsel %vm1627_vm3, %v3276_v27, %v3272_v25 }
 0xdea   : > { %v1615_v41 = vpop.permute.xlu0 %1614 }
 0xdeb   : > { %v3364_v42 = vmul.f32 %v2971_v33, %v1615_v41  ;;  %v1858_v41 = vsel %vm1743_vm4, %v3274_v26, %v1857_v40 }
 0xded   : > { %v1631_v43 = vrot.slane %v3364_v42, 5 }
 0xdef   : > { %1632 = vrot.lane.b32.xlu1 %v1631_v43, %s3032_s20 }
 0xe61   : > { %v1633_v50 = vpop.permute.xlu1 %1632 }
 0xe62   : > { %v1635_v52 = vsel %vm1280_vm13, %v1628_v49, %v1633_v50 }
 0xe63   : > { %v1637_v53 = vrot.slane %v1635_v52, 3 }
 0xe65   : > { %2720 = vmatmul.mubr.msk.f32.vlgmr.msra.gmra.mrb[12].mxu1 %vm1288_vm15, %v1637_v53 }
 0xe66   : > { %2871 = vmatpush3.bf16.msra.mxu1 %v3219_v3  ;;  %2757 = vmatprep.mubr.msk.f32.mxu1 %vm3029_vm0, %v3028_v6 }
 0xe67   : > { %2872 = vmatprep.subr.bf16.mxu1 %v3031_v2 }
 0xe6a   : > { %2874 = vmatpush3.bf16.msra.mxu1 %v3232_v7 }
 0xe6b   : > { %2875 = vmatprep.subr.bf16.mxu1 %v3031_v2 }
 0xe6e   : > { %2877 = vmatpush3.bf16.msra.mxu1 %v3243_v10 }
 0xe6f   : > { %2878 = vmatprep.subr.bf16.mxu1 %v3031_v2 }
 0xe72   : > { %2880 = vmatpush3.bf16.msra.mxu1 %v3256_v13 }
 0xe73   : > { %2893 = vmatprep.subr.bf16.mxu1 %v3031_v2 }
 0xf38   : > { %v1706_v54 = vpop.f32.mrb[12].mxu1 }
 0xf39   : > { %v1707_v55 = vadd.f32 %v3304_v46, %v1706_v54  ;;  %v2721_v56 = vpop.f32.mrb[13].mxu1 }
 0xf3b   : > { %2974 = vtanh.f32 %v1707_v55  ;;  %v2497_v58 = vmul.f32 -1.442695, %v1707_v55 }
 0xf3d   : > { %2976 = vpow2.f32 %v2497_v58 }
 0xf45   : > { %v2975_v57 = vpop.eup %2974 }
 0xf46   : > { %1719 = vrot.lane.b32.xlu0 %v2975_v57, %s3032_s20 }
 0xf47   : > { %v2977_v59 = vpop.eup %2976 }
 0xf48   : > { %v1713_v60 = vadd.f32 1.0, %v2977_v59 }
 0xf4a   : > { %2978 = vrcp.f32 %v1713_v60 }
 0xf54   : > { %v2979_v61 = vpop.eup %2978 }
 0xf55   : > { %v1717_v1 = vmul.f32 %v2979_v61, %v1611_v38 }
 0xfb8   : > { %v1720_v62 = vpop.permute.xlu0 %1719 }
 0xfb9   : > { %v1722_v63 = vmul.f32 %v2979_v61, %v1720_v62 }
 0xfbb   : > { %1724 = vrot.lane.b32.xlu1 %v1722_v63, %s3033_s21 }
0x102d   : > { %v1725_v4 = vpop.permute.xlu1 %1724 }
0x102e   : > { %v1727_v5 = vadd.f32 %v1725_v4, %v1717_v1 }
0x1030   : > { %2980 = vtanh.f32 %v1727_v5 }
0x103a   : > { %v2981_v8 = vpop.eup %2980 }
0x103b   : > { %1730 = vrot.lane.b32.xlu0 %v2981_v8, %s3032_s20  ;;  %v1978_v8 = vsel %vm1271_vm11, %v3280_v30, %v3274_v26 }
0x10ad   : > { %v1731_v9 = vpop.permute.xlu0 %1730 }
0x10ae   : > { %v3391_v11 = vmul.f32 %v2979_v61, %v1731_v9 }
0x10b0   : > { %v1747_v12 = vrot.slane %v3391_v11, 4 }
0x10b2   : > { %1748 = vrot.lane.b32.xlu1 %v1747_v12, %s3032_s20 }
0x1124   : > { %v1749_v18 = vpop.permute.xlu1 %1748 }
0x1125   : > { %v1751_v19 = vsel %vm1280_vm13, %v1744_v16, %v1749_v18 }
0x1126   : > { %v1753_v20 = vrot.slane %v1751_v19, 4 }
0x1128   : > { %2739 = vmatmul.mubr.msk.f32.vlgmr.msra.gmra.mrb[10].mxu0 %vm1288_vm15, %v1753_v20 }
0x1129   : > { %2883 = vmatpush3.bf16.msra.mxu0 %v3219_v3  ;;  %2776 = vmatprep.mubr.msk.f32.mxu0 %vm3029_vm0, %v3028_v6 }
0x112a   : > { %2884 = vmatprep.subr.bf16.mxu0 %v3031_v2 }
0x112d   : > { %2886 = vmatpush3.bf16.msra.mxu0 %v3232_v7 }
0x112e   : > { %2887 = vmatprep.subr.bf16.mxu0 %v3031_v2 }
0x1131   : > { %2889 = vmatpush3.bf16.msra.mxu0 %v3243_v10 }
0x1132   : > { %2890 = vmatprep.subr.bf16.mxu0 %v3031_v2 }
0x1135   : > { %2892 = vmatpush3.bf16.msra.mxu0 %v3256_v13 }
0x1136   : > { %2905 = vmatprep.subr.bf16.mxu0 %v3031_v2 }
0x11fb   : > { %v1822_v21 = vpop.f32.mrb[10].mxu0 }
0x11fc   : > { %v1823_v22 = vadd.f32 %v3304_v46, %v1822_v21  ;;  %v2740_v23 = vpop.f32.mrb[11].mxu0 }
0x11fe   : > { %2982 = vtanh.f32 %v1823_v22  ;;  %v2499_v28 = vmul.f32 -1.442695, %v1823_v22 }
0x1200   : > { %2984 = vpow2.f32 %v2499_v28 }
0x1208   : > { %v2983_v24 = vpop.eup %2982 }
0x1209   : > { %1835 = vrot.lane.b32.xlu0 %v2983_v24, %s3032_s20 }
0x120a   : > { %v2985_v29 = vpop.eup %2984 }
0x120b   : > { %v1829_v39 = vadd.f32 1.0, %v2985_v29 }
0x120d   : > { %2986 = vrcp.f32 %v1829_v39 }
0x1217   : > { %v2987_v44 = vpop.eup %2986 }
0x1218   : > { %v1833_v32 = vmul.f32 %v2987_v44, %v1727_v5  ;;  %v1977_v5 = vsel %vm1743_vm4, %v3276_v27, %v3272_v25 }
0x127b   : > { %v1836_v48 = vpop.permute.xlu0 %1835 }
0x127c   : > { %v1838_v31 = vmul.f32 %v2987_v44, %v1836_v48 }
0x127e   : > { %1840 = vrot.lane.b32.xlu1 %v1838_v31, %s3033_s21 }
0x12f0   : > { %v1841_v33 = vpop.permute.xlu1 %1840 }
0x12f1   : > { %v1843_v34 = vadd.f32 %v1841_v33, %v1833_v32 }
0x12f3   : > { %2988 = vtanh.f32 %v1843_v34 }
0x12fd   : > { %v2989_v35 = vpop.eup %2988 }
0x12fe   : > { %1846 = vrot.lane.b32.xlu0 %v2989_v35, %s3032_s20 }
0x1370   : > { %v1847_v36 = vpop.permute.xlu0 %1846 }
0x1371   : > { %v3418_v37 = vmul.f32 %v2987_v44, %v1847_v36  ;;  %v2097_v36 = vsel %vm1271_vm11, %v3274_v26, %v3276_v27  ;;  %v1256_v26 = vld [vmem:[%s432_s24] sm:$0xf]  ;;  %s3034_s24 = smov 96  }
0x1372   : > { %vm1386_vm7 = vcmp.eq.s32.totalorder %v1256_v26, 1  ;;  %vm1618_vm8 = vcmp.eq.s32.totalorder %v1256_v26, 3  ;;  %vm1850_vm9 = vcmp.eq.s32.totalorder %v1256_v26, 5  ;;  %vm2090_vm10 = vcmp.eq.s32.totalorder %v1256_v26, 7 }
0x1373   : > { %v1862_v38 = vrot.slane %v3418_v37, 3  ;;  %v1387_v27 = vsel %vm1386_vm7, 1, %v3026_v0  ;;  %vm1502_vm11 = vcmp.eq.s32.totalorder %v1256_v26, 2  ;;  %vm1970_vm14 = vcmp.eq.s32.totalorder %v1256_v26, 6 }
0x1375   : > { %1863 = vrot.lane.b32.xlu1 %v1862_v38, %s3032_s20  ;;  %v2098_v38 = vsel %vm1274_vm12, %v3280_v30, %v2097_v36  ;;  %vm1734_vm12 = vcmp.eq.s32.totalorder %v1256_v26, 4 }
0x13e7   : > { %v1864_v43 = vpop.permute.xlu1 %1863 }
0x13e8   : > { %v1866_v45 = vsel %vm1280_vm13, %v1858_v41, %v1864_v43  ;;  %v1867_v47 = vsel %vm1280_vm13, %v3280_v30, %v1864_v43  ;;  %v1619_v30 = vsel %vm1618_vm8, 1, %v3026_v0  ;;  %vm2337_vm8 = vcmask 257026  }
0x13e9   : > { %v1871_v49 = vrot.slane %v1866_v45, 5  ;;  %v1872_v50 = vrot.slane %v1867_v47, 5 }
0x13eb   : > { %v1873_v52 = vsel %vm1870_vm5, %v1871_v49, %v1872_v50 }
0x13ec   : > { %2758 = vmatmul.mubr.msk.f32.vlgmr.msra.gmra.mrb[14].mxu1 %vm1288_vm15, %v1873_v52 }
0x13ed   : > { %2895 = vmatpush3.bf16.msra.mxu1 %v3219_v3  ;;  %2795 = vmatprep.mubr.msk.f32.mxu1 %vm3029_vm0, %v3028_v6 }
0x13ee   : > { %2896 = vmatprep.subr.bf16.mxu1 %v3031_v2 }
0x13f1   : > { %2898 = vmatpush3.bf16.msra.mxu1 %v3232_v7 }
0x13f2   : > { %2899 = vmatprep.subr.bf16.mxu1 %v3031_v2 }
0x13f5   : > { %2901 = vmatpush3.bf16.msra.mxu1 %v3243_v10 }
0x13f6   : > { %2902 = vmatprep.subr.bf16.mxu1 %v3031_v2 }
0x13f9   : > { %2904 = vmatpush3.bf16.msra.mxu1 %v3256_v13 }
0x14bf   : > { %v1942_v53 = vpop.f32.mrb[14].mxu1 }
0x14c0   : > { %v1943_v54 = vadd.f32 %v3304_v46, %v1942_v53  ;;  %v2759_v55 = vpop.f32.mrb[15].mxu1 }
0x14c2   : > { %2990 = vtanh.f32 %v1943_v54  ;;  %v2501_v56 = vmul.f32 -1.442695, %v1943_v54  ;;  %v2091_v54 = vsel %vm2090_vm10, 1, %v3026_v0  ;;  %vm2334_vm10 = vcmask 254976  }
0x14c4   : > { %2992 = vpow2.f32 %v2501_v56 }
0x14cc   : > { %v2991_v3 = vpop.eup %2990 }
0x14cd   : > { %1955 = vrot.lane.b32.xlu0 %v2991_v3, %s3032_s20 }
0x14ce   : > { %v2993_v57 = vpop.eup %2992 }
0x14cf   : > { %v1949_v7 = vadd.f32 1.0, %v2993_v57 }
0x14d1   : > { %2994 = vrcp.f32 %v1949_v7 }
0x14db   : > { %v2995_v58 = vpop.eup %2994 }
0x14dc   : > { %v1953_v60 = vmul.f32 %v2995_v58, %v1843_v34 }
0x153f   : > { %v1956_v59 = vpop.permute.xlu0 %1955 }
0x1540   : > { %v1958_v10 = vmul.f32 %v2995_v58, %v1956_v59  ;;  %v1503_v59 = vsel %vm1502_vm11, 1, %v3026_v0 }
0x1542   : > { %1960 = vrot.lane.b32.xlu1 %v1958_v10, %s3033_s21  ;;  %v1735_v10 = vsel %vm1734_vm12, 1, %v3026_v0 }
0x15b4   : > { %v1961_v13 = vpop.permute.xlu1 %1960 }
0x15b5   : > { %v1963_v61 = vadd.f32 %v1961_v13, %v1953_v60  ;;  %v1971_v60 = vsel %vm1970_vm14, 1, %v3026_v0 }
0x15b7   : > { %2996 = vtanh.f32 %v1963_v61 }
0x15c1   : > { %v2997_v62 = vpop.eup %2996 }
0x15c2   : > { %1966 = vrot.lane.b32.xlu0 %v2997_v62, %s3032_s20 }
0x1634   : > { %v1967_v63 = vpop.permute.xlu0 %1966 }
0x1635   : > { %v3444_v1 = vmul.f32 %v2995_v58, %v1967_v63 }
0x1637   : > { %v1982_v4 = vrot.slane %v3444_v1, 2 }
0x1639   : > { %1983 = vrot.lane.b32.xlu1 %v1982_v4, %s3032_s20  ;;  %v2217_v4 = vld [vmem:[%s3543_s8] sm:$0xff] }
0x16ab   : > { %v1984_v9 = vpop.permute.xlu1 %1983 }
0x16ac   : > { %v1986_v12 = vsel %vm1280_vm13, %v1977_v5, %v1984_v9  ;;  %v1987_v14 = vsel %vm1280_vm13, %v1978_v8, %v1984_v9  ;;  %v2218_v5 = vld [vmem:[%s3543_s8 + $0x8] sm:$0xff]  ;;  %v2219_v8 = vld [vmem:[%s3543_s8 + $0x10] sm:$0xff] }
0x16ad   : > { %v1991_v15 = vrot.slane %v1986_v12, 6  ;;  %v1992_v16 = vrot.slane %v1987_v14, 6  ;;  %v2906_v9 = vpack.c.bf16 %v2218_v5, %v2217_v4 }
0x16af   : > { %v1993_v18 = vsel %vm1990_vm6, %v1991_v15, %v1992_v16 }
0x16b0   : > { %2777 = vmatmul.mubr.msk.f32.vlgmr.msra.gmra.mrb[12].mxu0 %vm1288_vm15, %v1993_v18 }
0x16b1   : > { %2806 = vmatprep.mubr.msk.f32.mxu0 %vm3029_vm0, %v3028_v6  ;;  %vm2110_vm0 = vcmask 1040384   ;;  %2907 = vmatpush3.bf16.msra.mxu0 %v2906_v9 }
0x16b2   : > { %2908 = vmatprep.subr.bf16.mxu0 %v3031_v2 }
0x1783   : > { %v2062_v19 = vpop.f32.mrb[12].mxu0 }
0x1784   : > { %v2063_v20 = vadd.f32 %v3304_v46, %v2062_v19  ;;  %v2778_v21 = vpop.f32.mrb[13].mxu0 }
0x1786   : > { %2998 = vtanh.f32 %v2063_v20  ;;  %v2503_v23 = vmul.f32 -1.442695, %v2063_v20 }
0x1788   : > { %3000 = vpow2.f32 %v2503_v23 }
0x1790   : > { %v2999_v22 = vpop.eup %2998 }
0x1791   : > { %2075 = vrot.lane.b32.xlu0 %v2999_v22, %s3032_s20 }
0x1792   : > { %v3001_v24 = vpop.eup %3000 }
0x1793   : > { %v2069_v28 = vadd.f32 1.0, %v3001_v24 }
0x1795   : > { %3002 = vrcp.f32 %v2069_v28 }
0x179f   : > { %v3003_v29 = vpop.eup %3002 }
0x17a0   : > { %v2073_v48 = vmul.f32 %v3003_v29, %v1963_v61 }
0x1803   : > { %v2076_v39 = vpop.permute.xlu0 %2075 }
0x1804   : > { %v2078_v44 = vmul.f32 %v3003_v29, %v2076_v39 }
0x1806   : > { %2080 = vrot.lane.b32.xlu1 %v2078_v44, %s3033_s21 }
0x1878   : > { %v2081_v6 = vpop.permute.xlu1 %2080 }
0x1879   : > { %v2083_v31 = vadd.f32 %v2081_v6, %v2073_v48 }
0x187b   : > { %3004 = vtanh.f32 %v2083_v31 }
0x1885   : > { %v3005_v32 = vpop.eup %3004 }
0x1886   : > { %2086 = vrot.lane.b32.xlu0 %v3005_v32, %s3032_s20 }
0x18f8   : > { %v2087_v33 = vpop.permute.xlu0 %2086 }
0x18f9   : > { %v3463_v34 = vmul.f32 %v3003_v29, %v2087_v33 }
0x18fb   : > { %v2102_v35 = vrot.slane %v3463_v34, 1 }
0x18fd   : > { %2103 = vrot.lane.b32.xlu1 %v2102_v35, %s3032_s20 }
0x196f   : > { %v2104_v40 = vpop.permute.xlu1 %2103 }
0x1970   : > { %v2106_v41 = vsel %vm1280_vm13, %v3272_v25, %v2104_v40  ;;  %v2107_v43 = vsel %vm1280_vm13, %v2098_v38, %v2104_v40 }
0x1971   : > { %v2111_v45 = vrot.slane %v2106_v41, 7  ;;  %v2112_v47 = vrot.slane %v2107_v43, 7 }
0x1973   : > { %v2113_v49 = vsel %vm2110_vm0, %v2111_v45, %v2112_v47 }
0x1974   : > { %2796 = vmatmul.mubr.msk.f32.vlgmr.msra.gmra.mrb[16].mxu1 %vm1288_vm15, %v2113_v49  ;;  %vm2210_vm15 = vcmp.eq.s32.totalorder %v1256_v26, 8 }
0x1975   : > { %v2211_v13 = vsel %vm2210_vm15, 1, %v3026_v0 }
0x1a47   : > { %v2182_v50 = vpop.f32.mrb[16].mxu1 }
0x1a48   : > { %v2183_v52 = vadd.f32 %v3304_v46, %v2182_v50  ;;  %v2797_v53 = vpop.f32.mrb[17].mxu1  ;;  %v1851_v46 = vsel %vm1850_vm9, 1, %v3026_v0  ;;  %v2220_v0 = vld [vmem:[%s3543_s8 + $0x18] sm:$0xff] }
0x1a49   : > { %v2909_v12 = vpack.c.bf16 %v2220_v0, %v2219_v8 }
0x1a4a   : > { %3006 = vtanh.f32 %v2183_v52  ;;  %v2505_v55 = vmul.f32 -1.442695, %v2183_v52 }
0x1a4b   : > { %2910 = vmatpush3.bf16.msra.mxu0 %v2909_v12 }
0x1a4c   : > { %3008 = vpow2.f32 %v2505_v55 }
0x1a54   : > { %v3007_v25 = vpop.eup %3006 }
0x1a55   : > { %2195 = vrot.lane.b32.xlu0 %v3007_v25, %s3032_s20 }
0x1a56   : > { %v3009_v3 = vpop.eup %3008 }
0x1a57   : > { %v2189_v56 = vadd.f32 1.0, %v3009_v3 }
0x1a59   : > { %1389 = vperm.xlu0 %2933, %v1387_v27   ;;  %3010 = vrcp.f32 %v2189_v56 }
0x1a5d   : > { %1621 = vperm.xlu0 %2933, %v1619_v30  }
0x1a61   : > { %1853 = vperm.xlu0 %2933, %v1851_v46  }
0x1a63   : > { %v3011_v57 = vpop.eup %3010 }
0x1a64   : > { %v2193_v61 = vmul.f32 %v3011_v57, %v2083_v31 }
0x1a65   : > { %2093 = vperm.xlu0 %2933, %v2091_v54  }
0x1ac7   : > { %v2196_v7 = vpop.permute.xlu0 %2195 }
0x1ac8   : > { %v2198_v58 = vmul.f32 %v3011_v57, %v2196_v7 }
0x1aca   : > { %2200 = vrot.lane.b32.xlu1 %v2198_v58, %s3033_s21 }
0x1ace   : > { %1505 = vperm.xlu1 %2932, %v1503_v59  }
0x1ad2   : > { %1737 = vperm.xlu1 %2932, %v1735_v10  }
0x1ad6   : > { %1973 = vperm.xlu1 %2932, %v1971_v60  }
0x1ad8   : > { %v1390_v15 = vpop.permute.xlu0 %1389 }
0x1ad9   : > { %vm1391_vm1 = vcmp.eq.s32.totalorder %v1390_v15, 1 }
0x1ada   : > { %2213 = vperm.xlu1 %2932, %v2211_v13   ;;  %v1392_v20 = vsel %vm1391_vm1, %v3310_v51, 0.0 }
0x1adc   : > { %v1622_v18 = vpop.permute.xlu0 %1621 }
0x1add   : > { %vm1623_vm4 = vcmp.eq.s32.totalorder %v1622_v18, 1 }
0x1ae0   : > { %v1854_v21 = vpop.permute.xlu0 %1853 }
0x1ae1   : > { %vm1855_vm6 = vcmp.eq.s32.totalorder %v1854_v21, 1 }
0x1ae4   : > { %v2094_v28 = vpop.permute.xlu0 %2093 }
0x1ae5   : > { %vm2095_vm0 = vcmp.eq.s32.totalorder %v2094_v28, 1 }
0x1b3c   : > { %v2201_v62 = vpop.permute.xlu1 %2200 }
0x1b3d   : > { %v2203_v63 = vadd.f32 %v2201_v62, %v2193_v61 }
0x1b3f   : > { %3012 = vtanh.f32 %v2203_v63 }
0x1b49   : > { %v3013_v14 = vpop.eup %3012 }
0x1b4a   : > { %2206 = vrot.lane.b32.xlu0 %v3013_v14, %s3032_s20 }
0x1b4d   : > { %v1506_v16 = vpop.permute.xlu1 %1505 }
0x1b4e   : > { %vm1507_vm2 = vcmp.eq.s32.totalorder %v1506_v16, 1 }
0x1b4f   : > { %v1508_v22 = vsel %vm1507_vm2, %v3337_v17, %v1392_v20 }
0x1b50   : > { %v1624_v2 = vsel %vm1623_vm4, %v3364_v42, %v1508_v22 }
0x1b51   : > { %v1738_v19 = vpop.permute.xlu1 %1737 }
0x1b52   : > { %vm1739_vm3 = vcmp.eq.s32.totalorder %v1738_v19, 1 }
0x1b53   : > { %v1740_v24 = vsel %vm1739_vm3, %v3391_v11, %v1624_v2  ;;  %v2506_v11 = vld [vmem:[%s3544_s9] ss:$0 sm:$0xff] }
0x1b54   : > { %v1856_v29 = vsel %vm1855_vm6, %v3418_v37, %v1740_v24 }
0x1b55   : > { %v1974_v23 = vpop.permute.xlu1 %1973 }
0x1b56   : > { %vm1975_vm5 = vcmp.eq.s32.totalorder %v1974_v23, 1 }
0x1b57   : > { %v1976_v39 = vsel %vm1975_vm5, %v3444_v1, %v1856_v29 }
0x1b58   : > { %v2096_v48 = vsel %vm2095_vm0, %v3463_v34, %v1976_v39 }
0x1b59   : > { %v2214_v51 = vpop.permute.xlu1 %2213 }
0x1b5a   : > { %vm2215_vm7 = vcmp.eq.s32.totalorder %v2214_v51, 1 }
0x1bbc   : > { %v2207_v44 = vpop.permute.xlu0 %2206 }
0x1bbd   : > { %v2209_v17 = vmul.f32 %v3011_v57, %v2207_v44 }
0x1bbf   : > { %v2216_v6 = vsel %vm2215_vm7, %v2209_v17, %v2096_v48 }
0x1bc0   : > { %2229 = vrot.lane.b32.xlu1 %v2216_v6, %s3033_s21 }
0x1c32   : > { %v2230_v42 = vpop.permute.xlu1 %2229 }
0x1c33   : > { %2338 = vst.msk [vmem:[%s449_s19 - $0x2] sm:$0xc] %vm2337_vm8, %v2230_v42  ;;  %2807 = vmatmul.mubr.msk.f32.vlgmr.msra.gmra.mrb[14].mxu0 %vm1280_vm13, %v2230_v42 }
0x1d06   : > { %v2299_v37 = vpop.f32.mrb[14].mxu0 }
0x1d07   : > { %v2300_v1 = vadd.f32 %v2506_v11, %v2299_v37  ;;  %v2808_v31 = vpop.f32.mrb[15].mxu0 }
0x1d09   : > { %vm2309_vm9 = vcmp.ge.f32.partialorder %v2300_v1, 0.0  ;;  %v2310_v32 = vmul.f32 0.1, %v2300_v1  ;;  %v2508_v34 = vmul.f32 -1.442695, %v2300_v1 }
0x1d0b   : > { %v2311_v33 = vsel %vm2309_vm9, %v2300_v1, %v2310_v32  ;;  %3014 = vpow2.f32 %v2508_v34 }
0x1d0c   : > { %2313 = vrot.lane.b32.xlu0 %v2311_v33, %s3034_s24 }
0x1d15   : > { %v3015_v35 = vpop.eup %3014 }
0x1d16   : > { %v2306_v36 = vadd.f32 1.0, %v3015_v35 }
0x1d18   : > { %3016 = vrcp.f32 %v2306_v36 }
0x1d22   : > { %v3017_v38 = vpop.eup %3016 }
0x1d7e   : > { %v2314_v40 = vpop.permute.xlu0 %2313 }
0x1d7f   : > { %v2316_v41 = vmul.f32 %v3017_v38, %v2314_v40 }
0x1d81   : > { %v2318_v43 = vmul.f32 0.1, %v2316_v41  ;;  %vm2317_vm13 = vcmp.ge.f32.partialorder %v2316_v41, 0.0 }
0x1d83   : > { %v2319_v45 = vsel %vm2317_vm13, %v2316_v41, %v2318_v43 }
0x1d84   : > { %2321 = vrot.lane.b32.xlu1 %v2319_v45, %s3032_s20 }
0x1df6   : > { %v2322_v47 = vpop.permute.xlu1 %2321 }
0x1df7   : > { %v2324_v49 = vmul.f32 %v3017_v38, %v2322_v47 }
0x1df9   : > { %2326 = vrot.lane.b32.xlu0 %v2324_v49, %s3033_s21 }
0x1e6b   : > { %v2327_v50 = vpop.permute.xlu0 %2326 }
0x1e6c   : > { %v2329_v52 = vadd.f32 %v2327_v50, %v2216_v6 }
0x1e6e   : > { %2331 = vrot.lane.b32.xlu1 %v2329_v52, %s3033_s21 }
0x1ee0   : > { %v2332_v53 = vpop.permute.xlu1 %2331 }
0x1ee1   : > { %2335 = vst.msk [vmem:[%s445_s26] sm:$0x3] %vm2334_vm10, %v2332_v53 }
0x1ee2 PF: > { %s22_s17 = sadd.s32 1, %s3024_s17  }
0x1ee3   : > { %p19_p4 = scmp.ge.s32.totalorder %s22_s17, 4  }
0x1ee5   :  { %21 = sbr.rel (!%p19_p4) target bundleno = 1 (0x1), region = 111 }

</bundles_post_ra>
